<compile_context>
chip_gen: v7x
topology: tpu7x:2x2x1
jax: 0.10.0
libtpu: 0.0.40
codegen_flags: <defaults>
</compile_context>

<pallas_src>
import jax
import jax.numpy as jnp
from jax.experimental import pallas as pl
from jax.experimental.pallas import tpu as pltpu


# Generation-aware VMEM budgeting: v7x has only 64 MiB VMEM per TC, so keep the
# double-buffered tile footprint <= 40 MiB and set the scoped limit explicitly.
_VMEM_TILE_BUDGET = 40 * 1024 * 1024
_VMEM_LIMIT_BYTES = 56 * 1024 * 1024


def round_up(x, m):
    return (x + m - 1) // m * m


def _divisor_candidates(dim, opts):
    c = [t for t in opts if t <= dim and dim % t == 0]
    return c if c else [dim]


def _matmul_tiles(M, K, N, in_bytes, out_bytes, budget=_VMEM_TILE_BUDGET):
    """Largest (tm, tn, tk) whose double-buffered footprint fits the VMEM budget."""
    tms = _divisor_candidates(M, (1024, 512, 256, 128, 64, 32, 16, 8))
    tns = _divisor_candidates(N, (512, 256, 128))
    tks = _divisor_candidates(K, (1024, 512, 256, 128))
    for tm in tms:
        for tn in tns:
            for tk in tks:
                fp = (2 * (tm * tk + tk * tn) * in_bytes   # double-buffered x / w tiles
                      + 2 * tn * 4                         # bias tile (f32)
                      + 2 * tm * tn * out_bytes            # double-buffered out tile
                      + tm * tn * 4)                       # f32 accumulator scratch
                if fp <= budget:
                    return tm, tn, tk
    return tms[-1], tns[-1], tks[-1]


def _pick_time_chunk(S, Bp, Hp, G4, budget=_VMEM_TILE_BUDGET):
    """Largest time-chunk whose recurrence VMEM footprint fits the budget."""
    for t in (256, 128, 64, 32, 16, 8, 4, 2, 1):
        if t > S or S % t:
            continue
        fp = (Hp * G4 * 2                 # resident W_hh (bf16, single-buffered)
              + 2 * t * Bp * G4 * 2       # gates_x chunk, double-buffered (bf16)
              + 2 * t * Bp * Hp * 2       # y chunk, double-buffered (bf16)
              + 2 * Bp * Hp * 4           # h/c f32 state scratch
              + 8 * Bp * Hp * 4)          # h0/c0/hf/cf pipeline buffers (f32, 2x each)
        if fp <= budget:
            return t
    return 1


# ----------------------------------------------------------------------------
# Tiled matmul + bias kernel:  out = X @ W + b   (bf16 operands, f32 accumulation)
# Used for (a) the hoisted input projection X @ W_ih + b over all timesteps and
# (b) the decoder Linear.
# ----------------------------------------------------------------------------
def _matmul_bias_kernel(x_ref, w_ref, b_ref, o_ref, acc_ref):
    k = pl.program_id(2)

    @pl.when(k == 0)
    def _():
        acc_ref[...] = jnp.zeros_like(acc_ref)

    acc_ref[...] += jnp.dot(x_ref[...], w_ref[...],
                            preferred_element_type=jnp.float32)

    @pl.when(k == pl.num_programs(2) - 1)
    def _():
        o_ref[...] = (acc_ref[...] + b_ref[...].astype(jnp.float32)).astype(o_ref.dtype)


def matmul_bias(x, w, b, out_dtype=None):
    """x: (M, K), w: (K, N), b: (1, N) -> (M, N).  M mult of 8, K/N mult of 128."""
    M, K = x.shape
    N = w.shape[1]
    out_dtype = out_dtype or x.dtype
    tm, tn, tk = _matmul_tiles(M, K, N,
                               in_bytes=jnp.dtype(x.dtype).itemsize,
                               out_bytes=jnp.dtype(out_dtype).itemsize)
    grid = (M // tm, N // tn, K // tk)
    return pl.pallas_call(
        _matmul_bias_kernel,
        out_shape=jax.ShapeDtypeStruct((M, N), out_dtype),
        grid_spec=pltpu.PrefetchScalarGridSpec(
            num_scalar_prefetch=0,
            grid=grid,
            in_specs=[
                pl.BlockSpec((tm, tk), lambda i, j, k: (i, k)),
                pl.BlockSpec((tk, tn), lambda i, j, k: (k, j)),
                pl.BlockSpec((1, tn), lambda i, j, k: (0, j)),
            ],
            out_specs=pl.BlockSpec((tm, tn), lambda i, j, k: (i, j)),
            scratch_shapes=[pltpu.VMEM((tm, tn), jnp.float32)],
        ),
        compiler_params=pltpu.CompilerParams(
            # parallel M/N axes -> megacore-splittable; reduction axis last.
            dimension_semantics=("parallel", "parallel", "arbitrary"),
            vmem_limit_bytes=_VMEM_LIMIT_BYTES),
    )(x, w, b)


# ----------------------------------------------------------------------------
# LSTM recurrence kernel: grid over time-CHUNKS; in-kernel (partially unrolled)
# fori_loop over the timesteps of a chunk.  h/c state lives in f32 VMEM scratch
# across the grid.  gates_x already contains X @ W_ih + (b_ih + b_hh), in bf16.
# ----------------------------------------------------------------------------
def _lstm_chunk_kernel(gx_ref, whh_hbm, h0_ref, c0_ref,      # inputs
                       y_ref, hf_ref, cf_ref,                # outputs
                       whh_vmem, h_sc, c_sc, dma_sem):       # scratch
    chunk = pl.program_id(0)
    T = gx_ref.shape[0]
    Hp = h_sc.shape[-1]

    @pl.when(chunk == 0)
    def _():
        # Copy W_hh HBM -> VMEM exactly once (bf16, single-buffered); it stays
        # resident for all chunks.
        cp = pltpu.make_async_copy(whh_hbm, whh_vmem, dma_sem)
        cp.start()
        h_sc[...] = h0_ref[...].astype(jnp.float32)
        c_sc[...] = c0_ref[...].astype(jnp.float32)
        cp.wait()

    def step(t, carry):
        # bf16 MXU operands, f32 accumulation; gate math stays f32.
        # TODO(synk): weight-stationary MXU driving (matmul_push_rhs / matmul_acc_lhs)
        # for small Bp, and a core-parallel batch split for v7x's 2 TensorCores.
        gates = gx_ref[t].astype(jnp.float32) + jnp.dot(
            h_sc[...].astype(jnp.bfloat16), whh_vmem[...],
            preferred_element_type=jnp.float32)
        # PyTorch gate order [i, f, g, o]; each slice is 128-lane aligned (Hp = k*128).
        i_g = jax.nn.sigmoid(gates[:, 0 * Hp:1 * Hp])
        f_g = jax.nn.sigmoid(gates[:, 1 * Hp:2 * Hp])
        g_g = jnp.tanh(gates[:, 2 * Hp:3 * Hp])
        o_g = jax.nn.sigmoid(gates[:, 3 * Hp:4 * Hp])
        c_new = f_g * c_sc[...] + i_g * g_g
        h_new = o_g * jnp.tanh(c_new)
        h_sc[...] = h_new
        c_sc[...] = c_new
        y_ref[t] = h_new.astype(y_ref.dtype)
        return carry

    # Partial unroll gives the scheduler visibility around the serial h dependency.
    jax.lax.fori_loop(0, T, step, 0, unroll=min(T, 8))

    # Final hidden/cell state written once, on the last chunk only.
    @pl.when(chunk == pl.num_programs(0) - 1)
    def _():
        hf_ref[...] = h_sc[...].astype(hf_ref.dtype)
        cf_ref[...] = c_sc[...].astype(cf_ref.dtype)


def lstm_recurrence(gates_x, w_hh, h0, c0):
    """gates_x: (S, Bp, 4*Hp) bf16 precomputed X@W_ih + bias; w_hh: (Hp, 4*Hp) bf16;
    h0, c0: (Bp, Hp) f32.  Returns (y (S,Bp,Hp) bf16, h_final (Bp,Hp) f32, c_final f32)."""
    S, Bp, G4 = gates_x.shape
    Hp = w_hh.shape[0]

    t_chunk = _pick_time_chunk(S, Bp, Hp, G4)
    n_chunks = S // t_chunk

    grid_spec = pltpu.PrefetchScalarGridSpec(
        num_scalar_prefetch=0,
        grid=(n_chunks,),
        in_specs=[
            pl.BlockSpec((t_chunk, Bp, G4), lambda c: (c, 0, 0)),  # gates_x chunk (pipelined)
            pl.BlockSpec(memory_space=pl.ANY),                     # W_hh: raw HBM, DMA'd once
            pl.BlockSpec((Bp, Hp), lambda c: (0, 0)),              # h0
            pl.BlockSpec((Bp, Hp), lambda c: (0, 0)),              # c0
        ],
        out_specs=[
            pl.BlockSpec((t_chunk, Bp, Hp), lambda c: (c, 0, 0)),  # y chunk (bf16)
            pl.BlockSpec((Bp, Hp), lambda c: (0, 0)),              # h_final (resident)
            pl.BlockSpec((Bp, Hp), lambda c: (0, 0)),              # c_final (resident)
        ],
        scratch_shapes=[
            pltpu.VMEM((Hp, G4), w_hh.dtype),      # resident W_hh (bf16)
            pltpu.VMEM((Bp, Hp), jnp.float32),     # h state
            pltpu.VMEM((Bp, Hp), jnp.float32),     # c state
            pltpu.SemaphoreType.DMA(()),           # W_hh copy semaphore
        ],
    )
    return pl.pallas_call(
        _lstm_chunk_kernel,
        out_shape=(
            jax.ShapeDtypeStruct((S, Bp, Hp), jnp.bfloat16),
            jax.ShapeDtypeStruct((Bp, Hp), jnp.float32),
            jax.ShapeDtypeStruct((Bp, Hp), jnp.float32),
        ),
        grid_spec=grid_spec,
        compiler_params=pltpu.CompilerParams(
            dimension_semantics=("arbitrary",),    # sequential recurrence over chunks
            vmem_limit_bytes=_VMEM_LIMIT_BYTES),
    )(gates_x, w_hh, h0, c0)


# ----------------------------------------------------------------------------
# Parameters (stored pre-padded to lane-dense shapes; weights in bf16, biases in
# f32; zero padding keeps padded lanes of h/c exactly zero through the recurrence).
# ----------------------------------------------------------------------------
def init_params(key, n_tokens, embedding_dim, hidden_dim, n_layers):
    Ep = round_up(embedding_dim, 128)
    Hp = round_up(hidden_dim, 128)
    Vp = round_up(n_tokens, 128)
    initrange = 1.0 / (hidden_dim ** 0.5)
    keys = jax.random.split(key, 2 + 4 * n_layers)

    def pad_gate_weight(w, rows_real, rows_pad, h_real):
        # w: (rows_real, 4*h_real) in [i,f,g,o] layout -> (rows_pad, 4*Hp), per-gate padded.
        out = jnp.zeros((rows_pad, 4 * Hp), jnp.float32)
        for g in range(4):
            out = out.at[:rows_real, g * Hp:g * Hp + h_real].set(
                w[:, g * h_real:(g + 1) * h_real])
        return out.astype(jnp.bfloat16)

    params = {}
    # encoder.weight ~ U(-0.1, 0.1)
    emb = jax.random.uniform(keys[0], (n_tokens, embedding_dim), jnp.float32, -0.1, 0.1)
    params["emb"] = (jnp.zeros((n_tokens, Ep), jnp.float32)
                     .at[:, :embedding_dim].set(emb).astype(jnp.bfloat16))
    # decoder: weight (n_tokens, hidden) stored transposed + padded (bf16); bias zeros (f32)
    w_dec = jax.random.uniform(keys[1], (hidden_dim, n_tokens), jnp.float32,
                               -initrange, initrange)
    params["w_dec_t"] = (jnp.zeros((Hp, Vp), jnp.float32)
                         .at[:hidden_dim, :n_tokens].set(w_dec).astype(jnp.bfloat16))
    params["b_dec"] = jnp.zeros((1, Vp), jnp.float32)

    params["lstm"] = []
    for l in range(n_layers):
        d_in = embedding_dim if l == 0 else hidden_dim
        d_in_p = Ep if l == 0 else Hp
        k_ih, k_hh, k_bih, k_bhh = keys[2 + 4 * l: 2 + 4 * (l + 1)]
        w_ih = jax.random.uniform(k_ih, (d_in, 4 * hidden_dim), jnp.float32,
                                  -initrange, initrange)
        w_hh = jax.random.uniform(k_hh, (hidden_dim, 4 * hidden_dim), jnp.float32,
                                  -initrange, initrange)
        b = (jax.random.uniform(k_bih, (4 * hidden_dim,), jnp.float32, -initrange, initrange)
             + jax.random.uniform(k_bhh, (4 * hidden_dim,), jnp.float32, -initrange, initrange))
        bias_p = jnp.zeros((1, 4 * Hp), jnp.float32)
        for g in range(4):
            bias_p = bias_p.at[0, g * Hp:g * Hp + hidden_dim].set(
                b[g * hidden_dim:(g + 1) * hidden_dim])
        params["lstm"].append(dict(
            w_ih=pad_gate_weight(w_ih, d_in, d_in_p, hidden_dim),
            w_hh=pad_gate_weight(w_hh, hidden_dim, Hp, hidden_dim),
            bias=bias_p))
    return params


# ----------------------------------------------------------------------------
# Forward
# ----------------------------------------------------------------------------
@jax.jit
def lang_model_rnn_forward(params, x_tokens, hidden):
    """x_tokens: (S, B) int32; hidden = (h0, c0) each (n_layers, B, H).
    Returns (decoded (S, B, n_tokens), (h_n, c_n))."""
    h0_all, c0_all = hidden
    S, B = x_tokens.shape
    L, _, H = h0_all.shape
    V = params["emb"].shape[0]
    Hp = params["lstm"][0]["w_hh"].shape[0]
    Vp = params["w_dec_t"].shape[1]
    Bp = round_up(B, 8)

    # Invariant: padded batch rows and padded feature lanes of h0/c0 are ZERO; together
    # with zero-padded per-gate weights this keeps padded lanes of h/c exactly zero
    # through the recurrence.
    x_p = jnp.pad(x_tokens, ((0, 0), (0, Bp - B)))
    h0_p = jnp.pad(h0_all.astype(jnp.float32), ((0, 0), (0, Bp - B), (0, Hp - H)))
    c0_p = jnp.pad(c0_all.astype(jnp.float32), ((0, 0), (0, Bp - B), (0, Hp - H)))

    # encoder (embedding gather, bf16 rows) + dropout (identity, eval mode)
    # TODO(synk): fuse the embedding gather into the layer-0 X@W_ih pre-pass via a
    # scalar-prefetched pl.Element row-gather index_map instead of materializing it in XLA.
    layer_in = jnp.take(params["emb"], x_p, axis=0)          # (S, Bp, Ep) bf16

    h_finals, c_finals = [], []
    for l, lp in enumerate(params["lstm"]):
        d_in = layer_in.shape[-1]
        # Hoisted input projection over ALL timesteps (one big bf16 MXU matmul);
        # gates_x intermediate emitted in bf16 to halve its HBM traffic.
        gx = matmul_bias(layer_in.reshape(S * Bp, d_in).astype(jnp.bfloat16),
                         lp["w_ih"], lp["bias"], out_dtype=jnp.bfloat16)
        gx = gx.reshape(S, Bp, -1)
        y, h_f, c_f = lstm_recurrence(gx, lp["w_hh"], h0_p[l], c0_p[l])
        h_finals.append(h_f[:B, :H])
        c_finals.append(c_f[:B, :H])
        layer_in = y                                         # bf16; inter-layer dropout: identity

    # decoder Linear on the REAL batch rows only (compact away batch padding — at B=2 this
    # removes 75% of the vocab-sized matmul's FLOPs/HBM traffic), then strip lane padding.
    dec_in = layer_in[:, :B, :].reshape(S * B, Hp).astype(jnp.bfloat16)
    M_dec = round_up(S * B, 8)
    if M_dec != S * B:
        dec_in = jnp.pad(dec_in, ((0, M_dec - S * B), (0, 0)))
    dec = matmul_bias(dec_in, params["w_dec_t"], params["b_dec"], out_dtype=jnp.float32)
    decoded = dec[:S * B].reshape(S, B, Vp)[:, :, :V]

    h_n = jnp.stack(h_finals, axis=0)
    c_n = jnp.stack(c_finals, axis=0)
    return decoded, (h_n, c_n)


# ----------------------------------------------------------------------------
# Pure-JAX reference mirroring the kernel's bf16-MXU / f32-state numerics,
# for a tight correctness check.
# ----------------------------------------------------------------------------
def _reference_forward(params, x_tokens, hidden):
    h0_all, c0_all = hidden
    S, B = x_tokens.shape
    L, _, H = h0_all.shape
    V = params["emb"].shape[0]
    Hp = params["lstm"][0]["w_hh"].shape[0]
    Vp = params["w_dec_t"].shape[1]
    Bp = round_up(B, 8)

    x_p = jnp.pad(x_tokens, ((0, 0), (0, Bp - B)))
    h0_p = jnp.pad(h0_all.astype(jnp.float32), ((0, 0), (0, Bp - B), (0, Hp - H)))
    c0_p = jnp.pad(c0_all.astype(jnp.float32), ((0, 0), (0, Bp - B), (0, Hp - H)))
    layer_in = jnp.take(params["emb"], x_p, axis=0)           # bf16

    h_fin, c_fin = [], []
    for l, lp in enumerate(params["lstm"]):
        gx = (jnp.einsum("sbe,eg->sbg", layer_in.astype(jnp.bfloat16), lp["w_ih"],
                         preferred_element_type=jnp.float32)
              + lp["bias"][0]).astype(jnp.bfloat16)

        def step(carry, gx_t, lp=lp):
            h, c = carry
            g = gx_t.astype(jnp.float32) + jnp.dot(
                h.astype(jnp.bfloat16), lp["w_hh"], preferred_element_type=jnp.float32)
            i = jax.nn.sigmoid(g[:, 0 * Hp:1 * Hp])
            f = jax.nn.sigmoid(g[:, 1 * Hp:2 * Hp])
            gg = jnp.tanh(g[:, 2 * Hp:3 * Hp])
            o = jax.nn.sigmoid(g[:, 3 * Hp:4 * Hp])
            c = f * c + i * gg
            h = o * jnp.tanh(c)
            return (h, c), h.astype(jnp.bfloat16)

        (h_f, c_f), ys = jax.lax.scan(step, (h0_p[l], c0_p[l]), gx)
        h_fin.append(h_f[:B, :H])
        c_fin.append(c_f[:B, :H])
        layer_in = ys

    dec = (jnp.dot(layer_in[:, :B, :].reshape(S * B, Hp).astype(jnp.bfloat16),
                   params["w_dec_t"], preferred_element_type=jnp.float32)
           + params["b_dec"][0])
    decoded = dec.reshape(S, B, Vp)[:, :, :V]
    return decoded, (jnp.stack(h_fin, 0), jnp.stack(c_fin, 0))


if __name__ == "__main__":
    n_tokens, embedding_dim, hidden_dim, n_layers = 50, 16, 32, 2
    seq_len, batch = 8, 2

    key = jax.random.PRNGKey(0)
    k_param, k_x = jax.random.split(key)
    params = init_params(k_param, n_tokens, embedding_dim, hidden_dim, n_layers)

    x = jax.random.randint(k_x, (seq_len, batch), 0, n_tokens, dtype=jnp.int32)
    h0 = jnp.zeros((n_layers, batch, hidden_dim), jnp.float32)
    c0 = jnp.zeros((n_layers, batch, hidden_dim), jnp.float32)

    decoded, (h_n, c_n) = lang_model_rnn_forward(params, x, (h0, c0))
    jax.block_until_ready((decoded, h_n, c_n))

    assert decoded.shape == (seq_len, batch, n_tokens)
    assert h_n.shape == (n_layers, batch, hidden_dim)
    assert c_n.shape == (n_layers, batch, hidden_dim)

    # Correctness check against a precision-mirrored pure-JAX reference.
    ref_dec, (ref_h, ref_c) = _reference_forward(params, x, (h0, c0))
    jax.block_until_ready((ref_dec, ref_h, ref_c))

    def _mad(a, b):
        return float(jnp.max(jnp.abs(a.astype(jnp.float32) - b.astype(jnp.float32))))

    tol = 2e-2   # bf16 MXU operands; reference mirrors the same rounding points
    assert _mad(decoded, ref_dec) < tol, _mad(decoded, ref_dec)
    assert _mad(h_n, ref_h) < tol, _mad(h_n, ref_h)
    assert _mad(c_n, ref_c) < tol, _mad(c_n, ref_c)

    print("KERNEL_OK")
</pallas_src>

<mosaic_0001>
module attributes {stable_mosaic.version = 11 : i64} {
  func.func @_matmul_bias_kernel(%arg0: i32, %arg1: i32, %arg2: i32, %arg3: memref<64x128xbf16, #tpu.memory_space<vmem>>, %arg4: memref<128x512xbf16, #tpu.memory_space<vmem>>, %arg5: memref<1x512xf32, #tpu.memory_space<vmem>>, %arg6: memref<64x512xbf16, #tpu.memory_space<vmem>>, %arg7: memref<64x512xf32, #tpu.memory_space<vmem>>) attributes {dimension_semantics = [#tpu.dimension_semantics<parallel>, #tpu.dimension_semantics<parallel>, #tpu.dimension_semantics<arbitrary>], iteration_bounds = array<i64: 1, 1, 1>, scalar_prefetch = 0 : i64, scratch_operands = 1 : i64, tpu.core_type = #tpu.core_type<tc>, window_params = [{transform_indices = @transform_0, window_bounds = array<i64: 64, 128>}, {transform_indices = @transform_1, window_bounds = array<i64: 128, 512>}, {transform_indices = @transform_2, window_bounds = array<i64: 1, 512>}, {transform_indices = @transform_3, window_bounds = array<i64: 64, 512>}]} {
    %c0_i32 = arith.constant 0 : i32
    %0 = arith.cmpi eq, %arg2, %c0_i32 : i32
    %1 = arith.extui %0 : i1 to i32
    %c0_i32_0 = arith.constant 0 : i32
    %2 = arith.cmpi ne, %1, %c0_i32_0 : i32
    scf.if %2 {
      %cst_10 = arith.constant 0.000000e+00 : f32
      %12 = vector.broadcast %cst_10 : f32 to vector<64x512xf32>
      %c0_11 = arith.constant 0 : index
      %c0_12 = arith.constant 0 : index
      %13 = vector.load %arg7[%c0_11, %c0_12] : memref<64x512xf32, #tpu.memory_space<vmem>>, vector<64x512xf32>
      tpu.vector_store %arg7[%c0_11, %c0_12], %12 {strides = array<i32>} : memref<64x512xf32, #tpu.memory_space<vmem>>, vector<64x512xf32>,
    } else {
    }
    %c0 = arith.constant 0 : index
    %c0_1 = arith.constant 0 : index
    %3 = vector.load %arg7[%c0, %c0_1] : memref<64x512xf32, #tpu.memory_space<vmem>>, vector<64x512xf32>
    %c0_2 = arith.constant 0 : index
    %c0_3 = arith.constant 0 : index
    %4 = vector.load %arg3[%c0_2, %c0_3] : memref<64x128xbf16, #tpu.memory_space<vmem>>, vector<64x128xbf16>
    %c0_4 = arith.constant 0 : index
    %c0_5 = arith.constant 0 : index
    %5 = vector.load %arg4[%c0_4, %c0_5] : memref<128x512xbf16, #tpu.memory_space<vmem>>, vector<128x512xbf16>
    %cst = arith.constant dense<0.000000e+00> : vector<64x512xf32>
    %6 = tpu.matmul %4, %5, %cst {dimension_numbers = #tpu.dot_dimension_numbers<[1], [0], [0], [1], [0, 0, 1, 1], [], []>} : vector<64x128xbf16>, vector<128x512xbf16>, vector<64x512xf32> -> vector<64x512xf32>
    %7 = arith.addf %3, %6 : vector<64x512xf32>
    %c0_6 = arith.constant 0 : index
    %c0_7 = arith.constant 0 : index
    %8 = vector.load %arg7[%c0_6, %c0_7] : memref<64x512xf32, #tpu.memory_space<vmem>>, vector<64x512xf32>
    tpu.vector_store %arg7[%c0_6, %c0_7], %7 {strides = array<i32>} : memref<64x512xf32, #tpu.memory_space<vmem>>, vector<64x512xf32>,
    %c0_i32_8 = arith.constant 0 : i32
    %9 = arith.cmpi eq, %arg2, %c0_i32_8 : i32
    %10 = arith.extui %9 : i1 to i32
    %c0_i32_9 = arith.constant 0 : i32
    %11 = arith.cmpi ne, %10, %c0_i32_9 : i32
    scf.if %11 {
      %c0_10 = arith.constant 0 : index
      %c0_11 = arith.constant 0 : index
      %12 = vector.load %arg7[%c0_10, %c0_11] : memref<64x512xf32, #tpu.memory_space<vmem>>, vector<64x512xf32>
      %c0_12 = arith.constant 0 : index
      %c0_13 = arith.constant 0 : index
      %13 = vector.load %arg5[%c0_12, %c0_13] : memref<1x512xf32, #tpu.memory_space<vmem>>, vector<1x512xf32>
      %14 = vector.broadcast %13 : vector<1x512xf32> to vector<64x512xf32>
      %15 = arith.addf %12, %14 : vector<64x512xf32>
      %16 = arith.truncf %15 : vector<64x512xf32> to vector<64x512xbf16>
      %c0_14 = arith.constant 0 : index
      %c0_15 = arith.constant 0 : index
      %17 = vector.load %arg6[%c0_14, %c0_15] : memref<64x512xbf16, #tpu.memory_space<vmem>>, vector<64x512xbf16>
      tpu.vector_store %arg6[%c0_14, %c0_15], %16 {strides = array<i32>} : memref<64x512xbf16, #tpu.memory_space<vmem>>, vector<64x512xbf16>,
    } else {
    }
    return
  }
  func.func @transform_0(%arg0: i32, %arg1: i32, %arg2: i32) -> (i32, i32) {
    %c0_i32 = arith.constant 0 : i32
    return %arg0, %arg2 : i32, i32
  }
  func.func @transform_1(%arg0: i32, %arg1: i32, %arg2: i32) -> (i32, i32) {
    %c0_i32 = arith.constant 0 : i32
    return %arg2, %arg1 : i32, i32
  }
  func.func @transform_2(%arg0: i32, %arg1: i32, %arg2: i32) -> (i32, i32) {
    %c0_i32 = arith.constant 0 : i32
    %c0_i32_0 = arith.constant 0 : i32
    return %c0_i32, %arg1 : i32, i32
  }
  func.func @transform_3(%arg0: i32, %arg1: i32, %arg2: i32) -> (i32, i32) {
    %c0_i32 = arith.constant 0 : i32
    return %arg0, %arg1 : i32, i32
  }
}

module attributes {stable_mosaic.version = 11 : i64} {
  func.func @_lstm_chunk_kernel(%arg0: i32, %arg1: memref<8x8x512xbf16, #tpu.memory_space<vmem>>, %arg2: memref<128x512xbf16, #tpu.memory_space<any>>, %arg3: memref<8x128xf32, #tpu.memory_space<vmem>>, %arg4: memref<8x128xf32, #tpu.memory_space<vmem>>, %arg5: memref<8x8x128xbf16, #tpu.memory_space<vmem>>, %arg6: memref<8x128xf32, #tpu.memory_space<vmem>>, %arg7: memref<8x128xf32, #tpu.memory_space<vmem>>, %arg8: memref<128x512xbf16, #tpu.memory_space<vmem>>, %arg9: memref<8x128xf32, #tpu.memory_space<vmem>>, %arg10: memref<8x128xf32, #tpu.memory_space<vmem>>, %arg11: memref<!tpu.dma_semaphore, #tpu.memory_space<semaphore_mem>>) attributes {dimension_semantics = [#tpu.dimension_semantics<arbitrary>], iteration_bounds = array<i64: 1>, scalar_prefetch = 0 : i64, scratch_operands = 4 : i64, tpu.core_type = #tpu.core_type<tc>, window_params = [{transform_indices = @transform_0, window_bounds = array<i64: 8, 8, 512>}, {}, {pipeline_mode = #tpu.pipeline_mode<synchronous>, transform_indices = @transform_2, window_bounds = array<i64: 8, 128>}, {pipeline_mode = #tpu.pipeline_mode<synchronous>, transform_indices = @transform_3, window_bounds = array<i64: 8, 128>}, {transform_indices = @transform_4, window_bounds = array<i64: 8, 8, 128>}, {pipeline_mode = #tpu.pipeline_mode<synchronous>, transform_indices = @transform_5, window_bounds = array<i64: 8, 128>}, {pipeline_mode = #tpu.pipeline_mode<synchronous>, transform_indices = @transform_6, window_bounds = array<i64: 8, 128>}]} {
    %c0_i32 = arith.constant 0 : i32
    %0 = arith.cmpi eq, %arg0, %c0_i32 : i32
    %1 = arith.extui %0 : i1 to i32
    %c0_i32_0 = arith.constant 0 : i32
    %2 = arith.cmpi ne, %1, %c0_i32_0 : i32
    scf.if %2 {
      tpu.enqueue_dma source(%arg2 : memref<128x512xbf16, #tpu.memory_space<any>>) target(%arg8 : memref<128x512xbf16, #tpu.memory_space<vmem>>) target_semaphore(%arg11 : memref<!tpu.dma_semaphore, #tpu.memory_space<semaphore_mem>>)
      %c0_146 = arith.constant 0 : index
      %c0_147 = arith.constant 0 : index
      %342 = vector.load %arg3[%c0_146, %c0_147] : memref<8x128xf32, #tpu.memory_space<vmem>>, vector<8x128xf32>
      %c0_148 = arith.constant 0 : index
      %c0_149 = arith.constant 0 : index
      %343 = vector.load %arg9[%c0_148, %c0_149] : memref<8x128xf32, #tpu.memory_space<vmem>>, vector<8x128xf32>
      tpu.vector_store %arg9[%c0_148, %c0_149], %342 {strides = array<i32>} : memref<8x128xf32, #tpu.memory_space<vmem>>, vector<8x128xf32>,
      %c0_150 = arith.constant 0 : index
      %c0_151 = arith.constant 0 : index
      %344 = vector.load %arg4[%c0_150, %c0_151] : memref<8x128xf32, #tpu.memory_space<vmem>>, vector<8x128xf32>
      %c0_152 = arith.constant 0 : index
      %c0_153 = arith.constant 0 : index
      %345 = vector.load %arg10[%c0_152, %c0_153] : memref<8x128xf32, #tpu.memory_space<vmem>>, vector<8x128xf32>
      tpu.vector_store %arg10[%c0_152, %c0_153], %344 {strides = array<i32>} : memref<8x128xf32, #tpu.memory_space<vmem>>, vector<8x128xf32>,
      tpu.wait_dma2 semaphore(%arg11 : memref<!tpu.dma_semaphore, #tpu.memory_space<semaphore_mem>>) src(%arg2 : memref<128x512xbf16, #tpu.memory_space<any>>) dst(%arg8 : memref<128x512xbf16, #tpu.memory_space<vmem>>)
    } else {
    }
    %c0_i32_1 = arith.constant 0 : i32
    %3 = arith.index_cast %c0_i32_1 : i32 to index
    %c0 = arith.constant 0 : index
    %c0_2 = arith.constant 0 : index
    %4 = vector.load %arg1[%3, %c0, %c0_2] : memref<8x8x512xbf16, #tpu.memory_space<vmem>>, vector<1x8x512xbf16>
    %5 = vector.shape_cast %4 : vector<1x8x512xbf16> to vector<8x512xbf16>
    %6 = arith.extf %5 : vector<8x512xbf16> to vector<8x512xf32>
    %c0_3 = arith.constant 0 : index
    %c0_4 = arith.constant 0 : index
    %7 = vector.load %arg9[%c0_3, %c0_4] : memref<8x128xf32, #tpu.memory_space<vmem>>, vector<8x128xf32>
    %8 = arith.truncf %7 : vector<8x128xf32> to vector<8x128xbf16>
    %c0_5 = arith.constant 0 : index
    %c0_6 = arith.constant 0 : index
    %9 = vector.load %arg8[%c0_5, %c0_6] : memref<128x512xbf16, #tpu.memory_space<vmem>>, vector<128x512xbf16>
    %cst = arith.constant dense<0.000000e+00> : vector<8x512xf32>
    %10 = tpu.matmul %8, %9, %cst {dimension_numbers = #tpu.dot_dimension_numbers<[1], [0], [0], [1], [0, 0, 1, 1], [], []>} : vector<8x128xbf16>, vector<128x512xbf16>, vector<8x512xf32> -> vector<8x512xf32>
    %11 = arith.addf %6, %10 : vector<8x512xf32>
    %12 = vector.extract_strided_slice %11 {offsets = [0, 0], sizes = [8, 128], strides = [1, 1]} : vector<8x512xf32> to vector<8x128xf32>
    %13 = arith.negf %12 : vector<8x128xf32>
    %14 = math.exp %13 : vector<8x128xf32>
    %cst_7 = arith.constant 1.000000e+00 : f32
    %15 = vector.broadcast %cst_7 : f32 to vector<8x128xf32>
    %16 = arith.addf %15, %14 : vector<8x128xf32>
    %17 = arith.divf %15, %16 : vector<8x128xf32>
    %18 = vector.extract_strided_slice %11 {offsets = [0, 128], sizes = [8, 128], strides = [1, 1]} : vector<8x512xf32> to vector<8x128xf32>
    %19 = arith.negf %18 : vector<8x128xf32>
    %20 = math.exp %19 : vector<8x128xf32>
    %cst_8 = arith.constant 1.000000e+00 : f32
    %21 = vector.broadcast %cst_8 : f32 to vector<8x128xf32>
    %22 = arith.addf %21, %20 : vector<8x128xf32>
    %23 = arith.divf %21, %22 : vector<8x128xf32>
    %24 = vector.extract_strided_slice %11 {offsets = [0, 256], sizes = [8, 128], strides = [1, 1]} : vector<8x512xf32> to vector<8x128xf32>
    %25 = math.tanh %24 : vector<8x128xf32>
    %26 = vector.extract_strided_slice %11 {offsets = [0, 384], sizes = [8, 128], strides = [1, 1]} : vector<8x512xf32> to vector<8x128xf32>
    %27 = arith.negf %26 : vector<8x128xf32>
    %28 = math.exp %27 : vector<8x128xf32>
    %cst_9 = arith.constant 1.000000e+00 : f32
    %29 = vector.broadcast %cst_9 : f32 to vector<8x128xf32>
    %30 = arith.addf %29, %28 : vector<8x128xf32>
    %31 = arith.divf %29, %30 : vector<8x128xf32>
    %c0_10 = arith.constant 0 : index
    %c0_11 = arith.constant 0 : index
    %32 = vector.load %arg10[%c0_10, %c0_11] : memref<8x128xf32, #tpu.memory_space<vmem>>, vector<8x128xf32>
    %33 = arith.mulf %23, %32 : vector<8x128xf32>
    %34 = arith.mulf %17, %25 : vector<8x128xf32>
    %35 = arith.addf %33, %34 : vector<8x128xf32>
    %36 = math.tanh %35 : vector<8x128xf32>
    %37 = arith.mulf %31, %36 : vector<8x128xf32>
    %c0_12 = arith.constant 0 : index
    %c0_13 = arith.constant 0 : index
    %38 = vector.load %arg9[%c0_12, %c0_13] : memref<8x128xf32, #tpu.memory_space<vmem>>, vector<8x128xf32>
    tpu.vector_store %arg9[%c0_12, %c0_13], %37 {strides = array<i32>} : memref<8x128xf32, #tpu.memory_space<vmem>>, vector<8x128xf32>,
    %c0_14 = arith.constant 0 : index
    %c0_15 = arith.constant 0 : index
    %39 = vector.load %arg10[%c0_14, %c0_15] : memref<8x128xf32, #tpu.memory_space<vmem>>, vector<8x128xf32>
    tpu.vector_store %arg10[%c0_14, %c0_15], %35 {strides = array<i32>} : memref<8x128xf32, #tpu.memory_space<vmem>>, vector<8x128xf32>,
    %40 = arith.truncf %37 : vector<8x128xf32> to vector<8x128xbf16>
    %41 = arith.index_cast %c0_i32_1 : i32 to index
    %c0_16 = arith.constant 0 : index
    %c0_17 = arith.constant 0 : index
    %42 = vector.load %arg5[%41, %c0_16, %c0_17] : memref<8x8x128xbf16, #tpu.memory_space<vmem>>, vector<1x8x128xbf16>
    %43 = vector.shape_cast %42 : vector<1x8x128xbf16> to vector<8x128xbf16>
    %44 = vector.shape_cast %40 : vector<8x128xbf16> to vector<1x8x128xbf16>
    tpu.vector_store %arg5[%41, %c0_16, %c0_17], %44 {strides = array<i32>} : memref<8x8x128xbf16, #tpu.memory_space<vmem>>, vector<1x8x128xbf16>,
    %c1_i32 = arith.constant 1 : i32
    %45 = arith.index_cast %c1_i32 : i32 to index
    %c0_18 = arith.constant 0 : index
    %c0_19 = arith.constant 0 : index
    %46 = vector.load %arg1[%45, %c0_18, %c0_19] : memref<8x8x512xbf16, #tpu.memory_space<vmem>>, vector<1x8x512xbf16>
    %47 = vector.shape_cast %46 : vector<1x8x512xbf16> to vector<8x512xbf16>
    %48 = arith.extf %47 : vector<8x512xbf16> to vector<8x512xf32>
    %c0_20 = arith.constant 0 : index
    %c0_21 = arith.constant 0 : index
    %49 = vector.load %arg9[%c0_20, %c0_21] : memref<8x128xf32, #tpu.memory_space<vmem>>, vector<8x128xf32>
    %50 = arith.truncf %49 : vector<8x128xf32> to vector<8x128xbf16>
    %c0_22 = arith.constant 0 : index
    %c0_23 = arith.constant 0 : index
    %51 = vector.load %arg8[%c0_22, %c0_23] : memref<128x512xbf16, #tpu.memory_space<vmem>>, vector<128x512xbf16>
    %cst_24 = arith.constant dense<0.000000e+00> : vector<8x512xf32>
    %52 = tpu.matmul %50, %51, %cst_24 {dimension_numbers = #tpu.dot_dimension_numbers<[1], [0], [0], [1], [0, 0, 1, 1], [], []>} : vector<8x128xbf16>, vector<128x512xbf16>, vector<8x512xf32> -> vector<8x512xf32>
    %53 = arith.addf %48, %52 : vector<8x512xf32>
    %54 = vector.extract_strided_slice %53 {offsets = [0, 0], sizes = [8, 128], strides = [1, 1]} : vector<8x512xf32> to vector<8x128xf32>
    %55 = arith.negf %54 : vector<8x128xf32>
    %56 = math.exp %55 : vector<8x128xf32>
    %cst_25 = arith.constant 1.000000e+00 : f32
    %57 = vector.broadcast %cst_25 : f32 to vector<8x128xf32>
    %58 = arith.addf %57, %56 : vector<8x128xf32>
    %59 = arith.divf %57, %58 : vector<8x128xf32>
    %60 = vector.extract_strided_slice %53 {offsets = [0, 128], sizes = [8, 128], strides = [1, 1]} : vector<8x512xf32> to vector<8x128xf32>
    %61 = arith.negf %60 : vector<8x128xf32>
    %62 = math.exp %61 : vector<8x128xf32>
    %cst_26 = arith.constant 1.000000e+00 : f32
    %63 = vector.broadcast %cst_26 : f32 to vector<8x128xf32>
    %64 = arith.addf %63, %62 : vector<8x128xf32>
    %65 = arith.divf %63, %64 : vector<8x128xf32>
    %66 = vector.extract_strided_slice %53 {offsets = [0, 256], sizes = [8, 128], strides = [1, 1]} : vector<8x512xf32> to vector<8x128xf32>
    %67 = math.tanh %66 : vector<8x128xf32>
    %68 = vector.extract_strided_slice %53 {offsets = [0, 384], sizes = [8, 128], strides = [1, 1]} : vector<8x512xf32> to vector<8x128xf32>
    %69 = arith.negf %68 : vector<8x128xf32>
    %70 = math.exp %69 : vector<8x128xf32>
    %cst_27 = arith.constant 1.000000e+00 : f32
    %71 = vector.broadcast %cst_27 : f32 to vector<8x128xf32>
    %72 = arith.addf %71, %70 : vector<8x128xf32>
    %73 = arith.divf %71, %72 : vector<8x128xf32>
    %c0_28 = arith.constant 0 : index
    %c0_29 = arith.constant 0 : index
    %74 = vector.load %arg10[%c0_28, %c0_29] : memref<8x128xf32, #tpu.memory_space<vmem>>, vector<8x128xf32>
    %75 = arith.mulf %65, %74 : vector<8x128xf32>
    %76 = arith.mulf %59, %67 : vector<8x128xf32>
    %77 = arith.addf %75, %76 : vector<8x128xf32>
    %78 = math.tanh %77 : vector<8x128xf32>
    %79 = arith.mulf %73, %78 : vector<8x128xf32>
    %c0_30 = arith.constant 0 : index
    %c0_31 = arith.constant 0 : index
    %80 = vector.load %arg9[%c0_30, %c0_31] : memref<8x128xf32, #tpu.memory_space<vmem>>, vector<8x128xf32>
    tpu.vector_store %arg9[%c0_30, %c0_31], %79 {strides = array<i32>} : memref<8x128xf32, #tpu.memory_space<vmem>>, vector<8x128xf32>,
    %c0_32 = arith.constant 0 : index
    %c0_33 = arith.constant 0 : index
    %81 = vector.load %arg10[%c0_32, %c0_33] : memref<8x128xf32, #tpu.memory_space<vmem>>, vector<8x128xf32>
    tpu.vector_store %arg10[%c0_32, %c0_33], %77 {strides = array<i32>} : memref<8x128xf32, #tpu.memory_space<vmem>>, vector<8x128xf32>,
    %82 = arith.truncf %79 : vector<8x128xf32> to vector<8x128xbf16>
    %83 = arith.index_cast %c1_i32 : i32 to index
    %c0_34 = arith.constant 0 : index
    %c0_35 = arith.constant 0 : index
    %84 = vector.load %arg5[%83, %c0_34, %c0_35] : memref<8x8x128xbf16, #tpu.memory_space<vmem>>, vector<1x8x128xbf16>
    %85 = vector.shape_cast %84 : vector<1x8x128xbf16> to vector<8x128xbf16>
    %86 = vector.shape_cast %82 : vector<8x128xbf16> to vector<1x8x128xbf16>
    tpu.vector_store %arg5[%83, %c0_34, %c0_35], %86 {strides = array<i32>} : memref<8x8x128xbf16, #tpu.memory_space<vmem>>, vector<1x8x128xbf16>,
    %c2_i32 = arith.constant 2 : i32
    %87 = arith.index_cast %c2_i32 : i32 to index
    %c0_36 = arith.constant 0 : index
    %c0_37 = arith.constant 0 : index
    %88 = vector.load %arg1[%87, %c0_36, %c0_37] : memref<8x8x512xbf16, #tpu.memory_space<vmem>>, vector<1x8x512xbf16>
    %89 = vector.shape_cast %88 : vector<1x8x512xbf16> to vector<8x512xbf16>
    %90 = arith.extf %89 : vector<8x512xbf16> to vector<8x512xf32>
    %c0_38 = arith.constant 0 : index
    %c0_39 = arith.constant 0 : index
    %91 = vector.load %arg9[%c0_38, %c0_39] : memref<8x128xf32, #tpu.memory_space<vmem>>, vector<8x128xf32>
    %92 = arith.truncf %91 : vector<8x128xf32> to vector<8x128xbf16>
    %c0_40 = arith.constant 0 : index
    %c0_41 = arith.constant 0 : index
    %93 = vector.load %arg8[%c0_40, %c0_41] : memref<128x512xbf16, #tpu.memory_space<vmem>>, vector<128x512xbf16>
    %cst_42 = arith.constant dense<0.000000e+00> : vector<8x512xf32>
    %94 = tpu.matmul %92, %93, %cst_42 {dimension_numbers = #tpu.dot_dimension_numbers<[1], [0], [0], [1], [0, 0, 1, 1], [], []>} : vector<8x128xbf16>, vector<128x512xbf16>, vector<8x512xf32> -> vector<8x512xf32>
    %95 = arith.addf %90, %94 : vector<8x512xf32>
    %96 = vector.extract_strided_slice %95 {offsets = [0, 0], sizes = [8, 128], strides = [1, 1]} : vector<8x512xf32> to vector<8x128xf32>
    %97 = arith.negf %96 : vector<8x128xf32>
    %98 = math.exp %97 : vector<8x128xf32>
    %cst_43 = arith.constant 1.000000e+00 : f32
    %99 = vector.broadcast %cst_43 : f32 to vector<8x128xf32>
    %100 = arith.addf %99, %98 : vector<8x128xf32>
    %101 = arith.divf %99, %100 : vector<8x128xf32>
    %102 = vector.extract_strided_slice %95 {offsets = [0, 128], sizes = [8, 128], strides = [1, 1]} : vector<8x512xf32> to vector<8x128xf32>
    %103 = arith.negf %102 : vector<8x128xf32>
    %104 = math.exp %103 : vector<8x128xf32>
    %cst_44 = arith.constant 1.000000e+00 : f32
    %105 = vector.broadcast %cst_44 : f32 to vector<8x128xf32>
    %106 = arith.addf %105, %104 : vector<8x128xf32>
    %107 = arith.divf %105, %106 : vector<8x128xf32>
    %108 = vector.extract_strided_slice %95 {offsets = [0, 256], sizes = [8, 128], strides = [1, 1]} : vector<8x512xf32> to vector<8x128xf32>
    %109 = math.tanh %108 : vector<8x128xf32>
    %110 = vector.extract_strided_slice %95 {offsets = [0, 384], sizes = [8, 128], strides = [1, 1]} : vector<8x512xf32> to vector<8x128xf32>
    %111 = arith.negf %110 : vector<8x128xf32>
    %112 = math.exp %111 : vector<8x128xf32>
    %cst_45 = arith.constant 1.000000e+00 : f32
    %113 = vector.broadcast %cst_45 : f32 to vector<8x128xf32>
    %114 = arith.addf %113, %112 : vector<8x128xf32>
    %115 = arith.divf %113, %114 : vector<8x128xf32>
    %c0_46 = arith.constant 0 : index
    %c0_47 = arith.constant 0 : index
    %116 = vector.load %arg10[%c0_46, %c0_47] : memref<8x128xf32, #tpu.memory_space<vmem>>, vector<8x128xf32>
    %117 = arith.mulf %107, %116 : vector<8x128xf32>
    %118 = arith.mulf %101, %109 : vector<8x128xf32>
    %119 = arith.addf %117, %118 : vector<8x128xf32>
    %120 = math.tanh %119 : vector<8x128xf32>
    %121 = arith.mulf %115, %120 : vector<8x128xf32>
    %c0_48 = arith.constant 0 : index
    %c0_49 = arith.constant 0 : index
    %122 = vector.load %arg9[%c0_48, %c0_49] : memref<8x128xf32, #tpu.memory_space<vmem>>, vector<8x128xf32>
    tpu.vector_store %arg9[%c0_48, %c0_49], %121 {strides = array<i32>} : memref<8x128xf32, #tpu.memory_space<vmem>>, vector<8x128xf32>,
    %c0_50 = arith.constant 0 : index
    %c0_51 = arith.constant 0 : index
    %123 = vector.load %arg10[%c0_50, %c0_51] : memref<8x128xf32, #tpu.memory_space<vmem>>, vector<8x128xf32>
    tpu.vector_store %arg10[%c0_50, %c0_51], %119 {strides = array<i32>} : memref<8x128xf32, #tpu.memory_space<vmem>>, vector<8x128xf32>,
    %124 = arith.truncf %121 : vector<8x128xf32> to vector<8x128xbf16>
    %125 = arith.index_cast %c2_i32 : i32 to index
    %c0_52 = arith.constant 0 : index
    %c0_53 = arith.constant 0 : index
    %126 = vector.load %arg5[%125, %c0_52, %c0_53] : memref<8x8x128xbf16, #tpu.memory_space<vmem>>, vector<1x8x128xbf16>
    %127 = vector.shape_cast %126 : vector<1x8x128xbf16> to vector<8x128xbf16>
    %128 = vector.shape_cast %124 : vector<8x128xbf16> to vector<1x8x128xbf16>
    tpu.vector_store %arg5[%125, %c0_52, %c0_53], %128 {strides = array<i32>} : memref<8x8x128xbf16, #tpu.memory_space<vmem>>, vector<1x8x128xbf16>,
    %c3_i32 = arith.constant 3 : i32
    %129 = arith.index_cast %c3_i32 : i32 to index
    %c0_54 = arith.constant 0 : index
    %c0_55 = arith.constant 0 : index
    %130 = vector.load %arg1[%129, %c0_54, %c0_55] : memref<8x8x512xbf16, #tpu.memory_space<vmem>>, vector<1x8x512xbf16>
    %131 = vector.shape_cast %130 : vector<1x8x512xbf16> to vector<8x512xbf16>
    %132 = arith.extf %131 : vector<8x512xbf16> to vector<8x512xf32>
    %c0_56 = arith.constant 0 : index
    %c0_57 = arith.constant 0 : index
    %133 = vector.load %arg9[%c0_56, %c0_57] : memref<8x128xf32, #tpu.memory_space<vmem>>, vector<8x128xf32>
    %134 = arith.truncf %133 : vector<8x128xf32> to vector<8x128xbf16>
    %c0_58 = arith.constant 0 : index
    %c0_59 = arith.constant 0 : index
    %135 = vector.load %arg8[%c0_58, %c0_59] : memref<128x512xbf16, #tpu.memory_space<vmem>>, vector<128x512xbf16>
    %cst_60 = arith.constant dense<0.000000e+00> : vector<8x512xf32>
    %136 = tpu.matmul %134, %135, %cst_60 {dimension_numbers = #tpu.dot_dimension_numbers<[1], [0], [0], [1], [0, 0, 1, 1], [], []>} : vector<8x128xbf16>, vector<128x512xbf16>, vector<8x512xf32> -> vector<8x512xf32>
    %137 = arith.addf %132, %136 : vector<8x512xf32>
    %138 = vector.extract_strided_slice %137 {offsets = [0, 0], sizes = [8, 128], strides = [1, 1]} : vector<8x512xf32> to vector<8x128xf32>
    %139 = arith.negf %138 : vector<8x128xf32>
    %140 = math.exp %139 : vector<8x128xf32>
    %cst_61 = arith.constant 1.000000e+00 : f32
    %141 = vector.broadcast %cst_61 : f32 to vector<8x128xf32>
    %142 = arith.addf %141, %140 : vector<8x128xf32>
    %143 = arith.divf %141, %142 : vector<8x128xf32>
    %144 = vector.extract_strided_slice %137 {offsets = [0, 128], sizes = [8, 128], strides = [1, 1]} : vector<8x512xf32> to vector<8x128xf32>
    %145 = arith.negf %144 : vector<8x128xf32>
    %146 = math.exp %145 : vector<8x128xf32>
    %cst_62 = arith.constant 1.000000e+00 : f32
    %147 = vector.broadcast %cst_62 : f32 to vector<8x128xf32>
    %148 = arith.addf %147, %146 : vector<8x128xf32>
    %149 = arith.divf %147, %148 : vector<8x128xf32>
    %150 = vector.extract_strided_slice %137 {offsets = [0, 256], sizes = [8, 128], strides = [1, 1]} : vector<8x512xf32> to vector<8x128xf32>
    %151 = math.tanh %150 : vector<8x128xf32>
    %152 = vector.extract_strided_slice %137 {offsets = [0, 384], sizes = [8, 128], strides = [1, 1]} : vector<8x512xf32> to vector<8x128xf32>
    %153 = arith.negf %152 : vector<8x128xf32>
    %154 = math.exp %153 : vector<8x128xf32>
    %cst_63 = arith.constant 1.000000e+00 : f32
    %155 = vector.broadcast %cst_63 : f32 to vector<8x128xf32>
    %156 = arith.addf %155, %154 : vector<8x128xf32>
    %157 = arith.divf %155, %156 : vector<8x128xf32>
    %c0_64 = arith.constant 0 : index
    %c0_65 = arith.constant 0 : index
    %158 = vector.load %arg10[%c0_64, %c0_65] : memref<8x128xf32, #tpu.memory_space<vmem>>, vector<8x128xf32>
    %159 = arith.mulf %149, %158 : vector<8x128xf32>
    %160 = arith.mulf %143, %151 : vector<8x128xf32>
    %161 = arith.addf %159, %160 : vector<8x128xf32>
    %162 = math.tanh %161 : vector<8x128xf32>
    %163 = arith.mulf %157, %162 : vector<8x128xf32>
    %c0_66 = arith.constant 0 : index
    %c0_67 = arith.constant 0 : index
    %164 = vector.load %arg9[%c0_66, %c0_67] : memref<8x128xf32, #tpu.memory_space<vmem>>, vector<8x128xf32>
    tpu.vector_store %arg9[%c0_66, %c0_67], %163 {strides = array<i32>} : memref<8x128xf32, #tpu.memory_space<vmem>>, vector<8x128xf32>,
    %c0_68 = arith.constant 0 : index
    %c0_69 = arith.constant 0 : index
    %165 = vector.load %arg10[%c0_68, %c0_69] : memref<8x128xf32, #tpu.memory_space<vmem>>, vector<8x128xf32>
    tpu.vector_store %arg10[%c0_68, %c0_69], %161 {strides = array<i32>} : memref<8x128xf32, #tpu.memory_space<vmem>>, vector<8x128xf32>,
    %166 = arith.truncf %163 : vector<8x128xf32> to vector<8x128xbf16>
    %167 = arith.index_cast %c3_i32 : i32 to index
    %c0_70 = arith.constant 0 : index
    %c0_71 = arith.constant 0 : index
    %168 = vector.load %arg5[%167, %c0_70, %c0_71] : memref<8x8x128xbf16, #tpu.memory_space<vmem>>, vector<1x8x128xbf16>
    %169 = vector.shape_cast %168 : vector<1x8x128xbf16> to vector<8x128xbf16>
    %170 = vector.shape_cast %166 : vector<8x128xbf16> to vector<1x8x128xbf16>
    tpu.vector_store %arg5[%167, %c0_70, %c0_71], %170 {strides = array<i32>} : memref<8x8x128xbf16, #tpu.memory_space<vmem>>, vector<1x8x128xbf16>,
    %c4_i32 = arith.constant 4 : i32
    %171 = arith.index_cast %c4_i32 : i32 to index
    %c0_72 = arith.constant 0 : index
    %c0_73 = arith.constant 0 : index
    %172 = vector.load %arg1[%171, %c0_72, %c0_73] : memref<8x8x512xbf16, #tpu.memory_space<vmem>>, vector<1x8x512xbf16>
    %173 = vector.shape_cast %172 : vector<1x8x512xbf16> to vector<8x512xbf16>
    %174 = arith.extf %173 : vector<8x512xbf16> to vector<8x512xf32>
    %c0_74 = arith.constant 0 : index
    %c0_75 = arith.constant 0 : index
    %175 = vector.load %arg9[%c0_74, %c0_75] : memref<8x128xf32, #tpu.memory_space<vmem>>, vector<8x128xf32>
    %176 = arith.truncf %175 : vector<8x128xf32> to vector<8x128xbf16>
    %c0_76 = arith.constant 0 : index
    %c0_77 = arith.constant 0 : index
    %177 = vector.load %arg8[%c0_76, %c0_77] : memref<128x512xbf16, #tpu.memory_space<vmem>>, vector<128x512xbf16>
    %cst_78 = arith.constant dense<0.000000e+00> : vector<8x512xf32>
    %178 = tpu.matmul %176, %177, %cst_78 {dimension_numbers = #tpu.dot_dimension_numbers<[1], [0], [0], [1], [0, 0, 1, 1], [], []>} : vector<8x128xbf16>, vector<128x512xbf16>, vector<8x512xf32> -> vector<8x512xf32>
    %179 = arith.addf %174, %178 : vector<8x512xf32>
    %180 = vector.extract_strided_slice %179 {offsets = [0, 0], sizes = [8, 128], strides = [1, 1]} : vector<8x512xf32> to vector<8x128xf32>
    %181 = arith.negf %180 : vector<8x128xf32>
    %182 = math.exp %181 : vector<8x128xf32>
    %cst_79 = arith.constant 1.000000e+00 : f32
    %183 = vector.broadcast %cst_79 : f32 to vector<8x128xf32>
    %184 = arith.addf %183, %182 : vector<8x128xf32>
    %185 = arith.divf %183, %184 : vector<8x128xf32>
    %186 = vector.extract_strided_slice %179 {offsets = [0, 128], sizes = [8, 128], strides = [1, 1]} : vector<8x512xf32> to vector<8x128xf32>
    %187 = arith.negf %186 : vector<8x128xf32>
    %188 = math.exp %187 : vector<8x128xf32>
    %cst_80 = arith.constant 1.000000e+00 : f32
    %189 = vector.broadcast %cst_80 : f32 to vector<8x128xf32>
    %190 = arith.addf %189, %188 : vector<8x128xf32>
    %191 = arith.divf %189, %190 : vector<8x128xf32>
    %192 = vector.extract_strided_slice %179 {offsets = [0, 256], sizes = [8, 128], strides = [1, 1]} : vector<8x512xf32> to vector<8x128xf32>
    %193 = math.tanh %192 : vector<8x128xf32>
    %194 = vector.extract_strided_slice %179 {offsets = [0, 384], sizes = [8, 128], strides = [1, 1]} : vector<8x512xf32> to vector<8x128xf32>
    %195 = arith.negf %194 : vector<8x128xf32>
    %196 = math.exp %195 : vector<8x128xf32>
    %cst_81 = arith.constant 1.000000e+00 : f32
    %197 = vector.broadcast %cst_81 : f32 to vector<8x128xf32>
    %198 = arith.addf %197, %196 : vector<8x128xf32>
    %199 = arith.divf %197, %198 : vector<8x128xf32>
    %c0_82 = arith.constant 0 : index
    %c0_83 = arith.constant 0 : index
    %200 = vector.load %arg10[%c0_82, %c0_83] : memref<8x128xf32, #tpu.memory_space<vmem>>, vector<8x128xf32>
    %201 = arith.mulf %191, %200 : vector<8x128xf32>
    %202 = arith.mulf %185, %193 : vector<8x128xf32>
    %203 = arith.addf %201, %202 : vector<8x128xf32>
    %204 = math.tanh %203 : vector<8x128xf32>
    %205 = arith.mulf %199, %204 : vector<8x128xf32>
    %c0_84 = arith.constant 0 : index
    %c0_85 = arith.constant 0 : index
    %206 = vector.load %arg9[%c0_84, %c0_85] : memref<8x128xf32, #tpu.memory_space<vmem>>, vector<8x128xf32>
    tpu.vector_store %arg9[%c0_84, %c0_85], %205 {strides = array<i32>} : memref<8x128xf32, #tpu.memory_space<vmem>>, vector<8x128xf32>,
    %c0_86 = arith.constant 0 : index
    %c0_87 = arith.constant 0 : index
    %207 = vector.load %arg10[%c0_86, %c0_87] : memref<8x128xf32, #tpu.memory_space<vmem>>, vector<8x128xf32>
    tpu.vector_store %arg10[%c0_86, %c0_87], %203 {strides = array<i32>} : memref<8x128xf32, #tpu.memory_space<vmem>>, vector<8x128xf32>,
    %208 = arith.truncf %205 : vector<8x128xf32> to vector<8x128xbf16>
    %209 = arith.index_cast %c4_i32 : i32 to index
    %c0_88 = arith.constant 0 : index
    %c0_89 = arith.constant 0 : index
    %210 = vector.load %arg5[%209, %c0_88, %c0_89] : memref<8x8x128xbf16, #tpu.memory_space<vmem>>, vector<1x8x128xbf16>
    %211 = vector.shape_cast %210 : vector<1x8x128xbf16> to vector<8x128xbf16>
    %212 = vector.shape_cast %208 : vector<8x128xbf16> to vector<1x8x128xbf16>
    tpu.vector_store %arg5[%209, %c0_88, %c0_89], %212 {strides = array<i32>} : memref<8x8x128xbf16, #tpu.memory_space<vmem>>, vector<1x8x128xbf16>,
    %c5_i32 = arith.constant 5 : i32
    %213 = arith.index_cast %c5_i32 : i32 to index
    %c0_90 = arith.constant 0 : index
    %c0_91 = arith.constant 0 : index
    %214 = vector.load %arg1[%213, %c0_90, %c0_91] : memref<8x8x512xbf16, #tpu.memory_space<vmem>>, vector<1x8x512xbf16>
    %215 = vector.shape_cast %214 : vector<1x8x512xbf16> to vector<8x512xbf16>
    %216 = arith.extf %215 : vector<8x512xbf16> to vector<8x512xf32>
    %c0_92 = arith.constant 0 : index
    %c0_93 = arith.constant 0 : index
    %217 = vector.load %arg9[%c0_92, %c0_93] : memref<8x128xf32, #tpu.memory_space<vmem>>, vector<8x128xf32>
    %218 = arith.truncf %217 : vector<8x128xf32> to vector<8x128xbf16>
    %c0_94 = arith.constant 0 : index
    %c0_95 = arith.constant 0 : index
    %219 = vector.load %arg8[%c0_94, %c0_95] : memref<128x512xbf16, #tpu.memory_space<vmem>>, vector<128x512xbf16>
    %cst_96 = arith.constant dense<0.000000e+00> : vector<8x512xf32>
    %220 = tpu.matmul %218, %219, %cst_96 {dimension_numbers = #tpu.dot_dimension_numbers<[1], [0], [0], [1], [0, 0, 1, 1], [], []>} : vector<8x128xbf16>, vector<128x512xbf16>, vector<8x512xf32> -> vector<8x512xf32>
    %221 = arith.addf %216, %220 : vector<8x512xf32>
    %222 = vector.extract_strided_slice %221 {offsets = [0, 0], sizes = [8, 128], strides = [1, 1]} : vector<8x512xf32> to vector<8x128xf32>
    %223 = arith.negf %222 : vector<8x128xf32>
    %224 = math.exp %223 : vector<8x128xf32>
    %cst_97 = arith.constant 1.000000e+00 : f32
    %225 = vector.broadcast %cst_97 : f32 to vector<8x128xf32>
    %226 = arith.addf %225, %224 : vector<8x128xf32>
    %227 = arith.divf %225, %226 : vector<8x128xf32>
    %228 = vector.extract_strided_slice %221 {offsets = [0, 128], sizes = [8, 128], strides = [1, 1]} : vector<8x512xf32> to vector<8x128xf32>
    %229 = arith.negf %228 : vector<8x128xf32>
    %230 = math.exp %229 : vector<8x128xf32>
    %cst_98 = arith.constant 1.000000e+00 : f32
    %231 = vector.broadcast %cst_98 : f32 to vector<8x128xf32>
    %232 = arith.addf %231, %230 : vector<8x128xf32>
    %233 = arith.divf %231, %232 : vector<8x128xf32>
    %234 = vector.extract_strided_slice %221 {offsets = [0, 256], sizes = [8, 128], strides = [1, 1]} : vector<8x512xf32> to vector<8x128xf32>
    %235 = math.tanh %234 : vector<8x128xf32>
    %236 = vector.extract_strided_slice %221 {offsets = [0, 384], sizes = [8, 128], strides = [1, 1]} : vector<8x512xf32> to vector<8x128xf32>
    %237 = arith.negf %236 : vector<8x128xf32>
    %238 = math.exp %237 : vector<8x128xf32>
    %cst_99 = arith.constant 1.000000e+00 : f32
    %239 = vector.broadcast %cst_99 : f32 to vector<8x128xf32>
    %240 = arith.addf %239, %238 : vector<8x128xf32>
    %241 = arith.divf %239, %240 : vector<8x128xf32>
    %c0_100 = arith.constant 0 : index
    %c0_101 = arith.constant 0 : index
    %242 = vector.load %arg10[%c0_100, %c0_101] : memref<8x128xf32, #tpu.memory_space<vmem>>, vector<8x128xf32>
    %243 = arith.mulf %233, %242 : vector<8x128xf32>
    %244 = arith.mulf %227, %235 : vector<8x128xf32>
    %245 = arith.addf %243, %244 : vector<8x128xf32>
    %246 = math.tanh %245 : vector<8x128xf32>
    %247 = arith.mulf %241, %246 : vector<8x128xf32>
    %c0_102 = arith.constant 0 : index
    %c0_103 = arith.constant 0 : index
    %248 = vector.load %arg9[%c0_102, %c0_103] : memref<8x128xf32, #tpu.memory_space<vmem>>, vector<8x128xf32>
    tpu.vector_store %arg9[%c0_102, %c0_103], %247 {strides = array<i32>} : memref<8x128xf32, #tpu.memory_space<vmem>>, vector<8x128xf32>,
    %c0_104 = arith.constant 0 : index
    %c0_105 = arith.constant 0 : index
    %249 = vector.load %arg10[%c0_104, %c0_105] : memref<8x128xf32, #tpu.memory_space<vmem>>, vector<8x128xf32>
    tpu.vector_store %arg10[%c0_104, %c0_105], %245 {strides = array<i32>} : memref<8x128xf32, #tpu.memory_space<vmem>>, vector<8x128xf32>,
    %250 = arith.truncf %247 : vector<8x128xf32> to vector<8x128xbf16>
    %251 = arith.index_cast %c5_i32 : i32 to index
    %c0_106 = arith.constant 0 : index
    %c0_107 = arith.constant 0 : index
    %252 = vector.load %arg5[%251, %c0_106, %c0_107] : memref<8x8x128xbf16, #tpu.memory_space<vmem>>, vector<1x8x128xbf16>
    %253 = vector.shape_cast %252 : vector<1x8x128xbf16> to vector<8x128xbf16>
    %254 = vector.shape_cast %250 : vector<8x128xbf16> to vector<1x8x128xbf16>
    tpu.vector_store %arg5[%251, %c0_106, %c0_107], %254 {strides = array<i32>} : memref<8x8x128xbf16, #tpu.memory_space<vmem>>, vector<1x8x128xbf16>,
    %c6_i32 = arith.constant 6 : i32
    %255 = arith.index_cast %c6_i32 : i32 to index
    %c0_108 = arith.constant 0 : index
    %c0_109 = arith.constant 0 : index
    %256 = vector.load %arg1[%255, %c0_108, %c0_109] : memref<8x8x512xbf16, #tpu.memory_space<vmem>>, vector<1x8x512xbf16>
    %257 = vector.shape_cast %256 : vector<1x8x512xbf16> to vector<8x512xbf16>
    %258 = arith.extf %257 : vector<8x512xbf16> to vector<8x512xf32>
    %c0_110 = arith.constant 0 : index
    %c0_111 = arith.constant 0 : index
    %259 = vector.load %arg9[%c0_110, %c0_111] : memref<8x128xf32, #tpu.memory_space<vmem>>, vector<8x128xf32>
    %260 = arith.truncf %259 : vector<8x128xf32> to vector<8x128xbf16>
    %c0_112 = arith.constant 0 : index
    %c0_113 = arith.constant 0 : index
    %261 = vector.load %arg8[%c0_112, %c0_113] : memref<128x512xbf16, #tpu.memory_space<vmem>>, vector<128x512xbf16>
    %cst_114 = arith.constant dense<0.000000e+00> : vector<8x512xf32>
    %262 = tpu.matmul %260, %261, %cst_114 {dimension_numbers = #tpu.dot_dimension_numbers<[1], [0], [0], [1], [0, 0, 1, 1], [], []>} : vector<8x128xbf16>, vector<128x512xbf16>, vector<8x512xf32> -> vector<8x512xf32>
    %263 = arith.addf %258, %262 : vector<8x512xf32>
    %264 = vector.extract_strided_slice %263 {offsets = [0, 0], sizes = [8, 128], strides = [1, 1]} : vector<8x512xf32> to vector<8x128xf32>
    %265 = arith.negf %264 : vector<8x128xf32>
    %266 = math.exp %265 : vector<8x128xf32>
    %cst_115 = arith.constant 1.000000e+00 : f32
    %267 = vector.broadcast %cst_115 : f32 to vector<8x128xf32>
    %268 = arith.addf %267, %266 : vector<8x128xf32>
    %269 = arith.divf %267, %268 : vector<8x128xf32>
    %270 = vector.extract_strided_slice %263 {offsets = [0, 128], sizes = [8, 128], strides = [1, 1]} : vector<8x512xf32> to vector<8x128xf32>
    %271 = arith.negf %270 : vector<8x128xf32>
    %272 = math.exp %271 : vector<8x128xf32>
    %cst_116 = arith.constant 1.000000e+00 : f32
    %273 = vector.broadcast %cst_116 : f32 to vector<8x128xf32>
    %274 = arith.addf %273, %272 : vector<8x128xf32>
    %275 = arith.divf %273, %274 : vector<8x128xf32>
    %276 = vector.extract_strided_slice %263 {offsets = [0, 256], sizes = [8, 128], strides = [1, 1]} : vector<8x512xf32> to vector<8x128xf32>
    %277 = math.tanh %276 : vector<8x128xf32>
    %278 = vector.extract_strided_slice %263 {offsets = [0, 384], sizes = [8, 128], strides = [1, 1]} : vector<8x512xf32> to vector<8x128xf32>
    %279 = arith.negf %278 : vector<8x128xf32>
    %280 = math.exp %279 : vector<8x128xf32>
    %cst_117 = arith.constant 1.000000e+00 : f32
    %281 = vector.broadcast %cst_117 : f32 to vector<8x128xf32>
    %282 = arith.addf %281, %280 : vector<8x128xf32>
    %283 = arith.divf %281, %282 : vector<8x128xf32>
    %c0_118 = arith.constant 0 : index
    %c0_119 = arith.constant 0 : index
    %284 = vector.load %arg10[%c0_118, %c0_119] : memref<8x128xf32, #tpu.memory_space<vmem>>, vector<8x128xf32>
    %285 = arith.mulf %275, %284 : vector<8x128xf32>
    %286 = arith.mulf %269, %277 : vector<8x128xf32>
    %287 = arith.addf %285, %286 : vector<8x128xf32>
    %288 = math.tanh %287 : vector<8x128xf32>
    %289 = arith.mulf %283, %288 : vector<8x128xf32>
    %c0_120 = arith.constant 0 : index
    %c0_121 = arith.constant 0 : index
    %290 = vector.load %arg9[%c0_120, %c0_121] : memref<8x128xf32, #tpu.memory_space<vmem>>, vector<8x128xf32>
    tpu.vector_store %arg9[%c0_120, %c0_121], %289 {strides = array<i32>} : memref<8x128xf32, #tpu.memory_space<vmem>>, vector<8x128xf32>,
    %c0_122 = arith.constant 0 : index
    %c0_123 = arith.constant 0 : index
    %291 = vector.load %arg10[%c0_122, %c0_123] : memref<8x128xf32, #tpu.memory_space<vmem>>, vector<8x128xf32>
    tpu.vector_store %arg10[%c0_122, %c0_123], %287 {strides = array<i32>} : memref<8x128xf32, #tpu.memory_space<vmem>>, vector<8x128xf32>,
    %292 = arith.truncf %289 : vector<8x128xf32> to vector<8x128xbf16>
    %293 = arith.index_cast %c6_i32 : i32 to index
    %c0_124 = arith.constant 0 : index
    %c0_125 = arith.constant 0 : index
    %294 = vector.load %arg5[%293, %c0_124, %c0_125] : memref<8x8x128xbf16, #tpu.memory_space<vmem>>, vector<1x8x128xbf16>
    %295 = vector.shape_cast %294 : vector<1x8x128xbf16> to vector<8x128xbf16>
    %296 = vector.shape_cast %292 : vector<8x128xbf16> to vector<1x8x128xbf16>
    tpu.vector_store %arg5[%293, %c0_124, %c0_125], %296 {strides = array<i32>} : memref<8x8x128xbf16, #tpu.memory_space<vmem>>, vector<1x8x128xbf16>,
    %c7_i32 = arith.constant 7 : i32
    %297 = arith.index_cast %c7_i32 : i32 to index
    %c0_126 = arith.constant 0 : index
    %c0_127 = arith.constant 0 : index
    %298 = vector.load %arg1[%297, %c0_126, %c0_127] : memref<8x8x512xbf16, #tpu.memory_space<vmem>>, vector<1x8x512xbf16>
    %299 = vector.shape_cast %298 : vector<1x8x512xbf16> to vector<8x512xbf16>
    %300 = arith.extf %299 : vector<8x512xbf16> to vector<8x512xf32>
    %c0_128 = arith.constant 0 : index
    %c0_129 = arith.constant 0 : index
    %301 = vector.load %arg9[%c0_128, %c0_129] : memref<8x128xf32, #tpu.memory_space<vmem>>, vector<8x128xf32>
    %302 = arith.truncf %301 : vector<8x128xf32> to vector<8x128xbf16>
    %c0_130 = arith.constant 0 : index
    %c0_131 = arith.constant 0 : index
    %303 = vector.load %arg8[%c0_130, %c0_131] : memref<128x512xbf16, #tpu.memory_space<vmem>>, vector<128x512xbf16>
    %cst_132 = arith.constant dense<0.000000e+00> : vector<8x512xf32>
    %304 = tpu.matmul %302, %303, %cst_132 {dimension_numbers = #tpu.dot_dimension_numbers<[1], [0], [0], [1], [0, 0, 1, 1], [], []>} : vector<8x128xbf16>, vector<128x512xbf16>, vector<8x512xf32> -> vector<8x512xf32>
    %305 = arith.addf %300, %304 : vector<8x512xf32>
    %306 = vector.extract_strided_slice %305 {offsets = [0, 0], sizes = [8, 128], strides = [1, 1]} : vector<8x512xf32> to vector<8x128xf32>
    %307 = arith.negf %306 : vector<8x128xf32>
    %308 = math.exp %307 : vector<8x128xf32>
    %cst_133 = arith.constant 1.000000e+00 : f32
    %309 = vector.broadcast %cst_133 : f32 to vector<8x128xf32>
    %310 = arith.addf %309, %308 : vector<8x128xf32>
    %311 = arith.divf %309, %310 : vector<8x128xf32>
    %312 = vector.extract_strided_slice %305 {offsets = [0, 128], sizes = [8, 128], strides = [1, 1]} : vector<8x512xf32> to vector<8x128xf32>
    %313 = arith.negf %312 : vector<8x128xf32>
    %314 = math.exp %313 : vector<8x128xf32>
    %cst_134 = arith.constant 1.000000e+00 : f32
    %315 = vector.broadcast %cst_134 : f32 to vector<8x128xf32>
    %316 = arith.addf %315, %314 : vector<8x128xf32>
    %317 = arith.divf %315, %316 : vector<8x128xf32>
    %318 = vector.extract_strided_slice %305 {offsets = [0, 256], sizes = [8, 128], strides = [1, 1]} : vector<8x512xf32> to vector<8x128xf32>
    %319 = math.tanh %318 : vector<8x128xf32>
    %320 = vector.extract_strided_slice %305 {offsets = [0, 384], sizes = [8, 128], strides = [1, 1]} : vector<8x512xf32> to vector<8x128xf32>
    %321 = arith.negf %320 : vector<8x128xf32>
    %322 = math.exp %321 : vector<8x128xf32>
    %cst_135 = arith.constant 1.000000e+00 : f32
    %323 = vector.broadcast %cst_135 : f32 to vector<8x128xf32>
    %324 = arith.addf %323, %322 : vector<8x128xf32>
    %325 = arith.divf %323, %324 : vector<8x128xf32>
    %c0_136 = arith.constant 0 : index
    %c0_137 = arith.constant 0 : index
    %326 = vector.load %arg10[%c0_136, %c0_137] : memref<8x128xf32, #tpu.memory_space<vmem>>, vector<8x128xf32>
    %327 = arith.mulf %317, %326 : vector<8x128xf32>
    %328 = arith.mulf %311, %319 : vector<8x128xf32>
    %329 = arith.addf %327, %328 : vector<8x128xf32>
    %330 = math.tanh %329 : vector<8x128xf32>
    %331 = arith.mulf %325, %330 : vector<8x128xf32>
    %c0_138 = arith.constant 0 : index
    %c0_139 = arith.constant 0 : index
    %332 = vector.load %arg9[%c0_138, %c0_139] : memref<8x128xf32, #tpu.memory_space<vmem>>, vector<8x128xf32>
    tpu.vector_store %arg9[%c0_138, %c0_139], %331 {strides = array<i32>} : memref<8x128xf32, #tpu.memory_space<vmem>>, vector<8x128xf32>,
    %c0_140 = arith.constant 0 : index
    %c0_141 = arith.constant 0 : index
    %333 = vector.load %arg10[%c0_140, %c0_141] : memref<8x128xf32, #tpu.memory_space<vmem>>, vector<8x128xf32>
    tpu.vector_store %arg10[%c0_140, %c0_141], %329 {strides = array<i32>} : memref<8x128xf32, #tpu.memory_space<vmem>>, vector<8x128xf32>,
    %334 = arith.truncf %331 : vector<8x128xf32> to vector<8x128xbf16>
    %335 = arith.index_cast %c7_i32 : i32 to index
    %c0_142 = arith.constant 0 : index
    %c0_143 = arith.constant 0 : index
    %336 = vector.load %arg5[%335, %c0_142, %c0_143] : memref<8x8x128xbf16, #tpu.memory_space<vmem>>, vector<1x8x128xbf16>
    %337 = vector.shape_cast %336 : vector<1x8x128xbf16> to vector<8x128xbf16>
    %338 = vector.shape_cast %334 : vector<8x128xbf16> to vector<1x8x128xbf16>
    tpu.vector_store %arg5[%335, %c0_142, %c0_143], %338 {strides = array<i32>} : memref<8x8x128xbf16, #tpu.memory_space<vmem>>, vector<1x8x128xbf16>,
    %c8_i32 = arith.constant 8 : i32
    %c0_i32_144 = arith.constant 0 : i32
    %339 = arith.cmpi eq, %arg0, %c0_i32_144 : i32
    %340 = arith.extui %339 : i1 to i32
    %c0_i32_145 = arith.constant 0 : i32
    %341 = arith.cmpi ne, %340, %c0_i32_145 : i32
    scf.if %341 {
      %c0_146 = arith.constant 0 : index
      %c0_147 = arith.constant 0 : index
      %342 = vector.load %arg9[%c0_146, %c0_147] : memref<8x128xf32, #tpu.memory_space<vmem>>, vector<8x128xf32>
      %c0_148 = arith.constant 0 : index
      %c0_149 = arith.constant 0 : index
      %343 = vector.load %arg6[%c0_148, %c0_149] : memref<8x128xf32, #tpu.memory_space<vmem>>, vector<8x128xf32>
      tpu.vector_store %arg6[%c0_148, %c0_149], %342 {strides = array<i32>} : memref<8x128xf32, #tpu.memory_space<vmem>>, vector<8x128xf32>,
      %c0_150 = arith.constant 0 : index
      %c0_151 = arith.constant 0 : index
      %344 = vector.load %arg10[%c0_150, %c0_151] : memref<8x128xf32, #tpu.memory_space<vmem>>, vector<8x128xf32>
      %c0_152 = arith.constant 0 : index
      %c0_153 = arith.constant 0 : index
      %345 = vector.load %arg7[%c0_152, %c0_153] : memref<8x128xf32, #tpu.memory_space<vmem>>, vector<8x128xf32>
      tpu.vector_store %arg7[%c0_152, %c0_153], %344 {strides = array<i32>} : memref<8x128xf32, #tpu.memory_space<vmem>>, vector<8x128xf32>,
    } else {
    }
    return
  }
  func.func @transform_0(%arg0: i32) -> (i32, i32, i32) {
    %c0_i32 = arith.constant 0 : i32
    %c0_i32_0 = arith.constant 0 : i32
    %c0_i32_1 = arith.constant 0 : i32
    return %arg0, %c0_i32, %c0_i32_0 : i32, i32, i32
  }
  func.func @transform_2(%arg0: i32) -> (i32, i32) {
    %c0_i32 = arith.constant 0 : i32
    %c0_i32_0 = arith.constant 0 : i32
    %c0_i32_1 = arith.constant 0 : i32
    return %c0_i32, %c0_i32_0 : i32, i32
  }
  func.func @transform_3(%arg0: i32) -> (i32, i32) {
    %c0_i32 = arith.constant 0 : i32
    %c0_i32_0 = arith.constant 0 : i32
    %c0_i32_1 = arith.constant 0 : i32
    return %c0_i32, %c0_i32_0 : i32, i32
  }
  func.func @transform_4(%arg0: i32) -> (i32, i32, i32) {
    %c0_i32 = arith.constant 0 : i32
    %c0_i32_0 = arith.constant 0 : i32
    %c0_i32_1 = arith.constant 0 : i32
    return %arg0, %c0_i32, %c0_i32_0 : i32, i32, i32
  }
  func.func @transform_5(%arg0: i32) -> (i32, i32) {
    %c0_i32 = arith.constant 0 : i32
    %c0_i32_0 = arith.constant 0 : i32
    %c0_i32_1 = arith.constant 0 : i32
    return %c0_i32, %c0_i32_0 : i32, i32
  }
  func.func @transform_6(%arg0: i32) -> (i32, i32) {
    %c0_i32 = arith.constant 0 : i32
    %c0_i32_0 = arith.constant 0 : i32
    %c0_i32_1 = arith.constant 0 : i32
    return %c0_i32, %c0_i32_0 : i32, i32
  }
}

module attributes {stable_mosaic.version = 11 : i64} {
  func.func @_matmul_bias_kernel(%arg0: i32, %arg1: i32, %arg2: i32, %arg3: memref<16x128xbf16, #tpu.memory_space<vmem>>, %arg4: memref<128x128xbf16, #tpu.memory_space<vmem>>, %arg5: memref<1x128xf32, #tpu.memory_space<vmem>>, %arg6: memref<16x128xf32, #tpu.memory_space<vmem>>, %arg7: memref<16x128xf32, #tpu.memory_space<vmem>>) attributes {dimension_semantics = [#tpu.dimension_semantics<parallel>, #tpu.dimension_semantics<parallel>, #tpu.dimension_semantics<arbitrary>], iteration_bounds = array<i64: 1, 1, 1>, scalar_prefetch = 0 : i64, scratch_operands = 1 : i64, tpu.core_type = #tpu.core_type<tc>, window_params = [{transform_indices = @transform_0, window_bounds = array<i64: 16, 128>}, {transform_indices = @transform_1, window_bounds = array<i64: 128, 128>}, {transform_indices = @transform_2, window_bounds = array<i64: 1, 128>}, {transform_indices = @transform_3, window_bounds = array<i64: 16, 128>}]} {
    %c0_i32 = arith.constant 0 : i32
    %0 = arith.cmpi eq, %arg2, %c0_i32 : i32
    %1 = arith.extui %0 : i1 to i32
    %c0_i32_0 = arith.constant 0 : i32
    %2 = arith.cmpi ne, %1, %c0_i32_0 : i32
    scf.if %2 {
      %cst_10 = arith.constant 0.000000e+00 : f32
      %12 = vector.broadcast %cst_10 : f32 to vector<16x128xf32>
      %c0_11 = arith.constant 0 : index
      %c0_12 = arith.constant 0 : index
      %13 = vector.load %arg7[%c0_11, %c0_12] : memref<16x128xf32, #tpu.memory_space<vmem>>, vector<16x128xf32>
      tpu.vector_store %arg7[%c0_11, %c0_12], %12 {strides = array<i32>} : memref<16x128xf32, #tpu.memory_space<vmem>>, vector<16x128xf32>,
    } else {
    }
    %c0 = arith.constant 0 : index
    %c0_1 = arith.constant 0 : index
    %3 = vector.load %arg7[%c0, %c0_1] : memref<16x128xf32, #tpu.memory_space<vmem>>, vector<16x128xf32>
    %c0_2 = arith.constant 0 : index
    %c0_3 = arith.constant 0 : index
    %4 = vector.load %arg3[%c0_2, %c0_3] : memref<16x128xbf16, #tpu.memory_space<vmem>>, vector<16x128xbf16>
    %c0_4 = arith.constant 0 : index
    %c0_5 = arith.constant 0 : index
    %5 = vector.load %arg4[%c0_4, %c0_5] : memref<128x128xbf16, #tpu.memory_space<vmem>>, vector<128x128xbf16>
    %cst = arith.constant dense<0.000000e+00> : vector<16x128xf32>
    %6 = tpu.matmul %4, %5, %cst {dimension_numbers = #tpu.dot_dimension_numbers<[1], [0], [0], [1], [0, 0, 1, 1], [], []>} : vector<16x128xbf16>, vector<128x128xbf16>, vector<16x128xf32> -> vector<16x128xf32>
    %7 = arith.addf %3, %6 : vector<16x128xf32>
    %c0_6 = arith.constant 0 : index
    %c0_7 = arith.constant 0 : index
    %8 = vector.load %arg7[%c0_6, %c0_7] : memref<16x128xf32, #tpu.memory_space<vmem>>, vector<16x128xf32>
    tpu.vector_store %arg7[%c0_6, %c0_7], %7 {strides = array<i32>} : memref<16x128xf32, #tpu.memory_space<vmem>>, vector<16x128xf32>,
    %c0_i32_8 = arith.constant 0 : i32
    %9 = arith.cmpi eq, %arg2, %c0_i32_8 : i32
    %10 = arith.extui %9 : i1 to i32
    %c0_i32_9 = arith.constant 0 : i32
    %11 = arith.cmpi ne, %10, %c0_i32_9 : i32
    scf.if %11 {
      %c0_10 = arith.constant 0 : index
      %c0_11 = arith.constant 0 : index
      %12 = vector.load %arg7[%c0_10, %c0_11] : memref<16x128xf32, #tpu.memory_space<vmem>>, vector<16x128xf32>
      %c0_12 = arith.constant 0 : index
      %c0_13 = arith.constant 0 : index
      %13 = vector.load %arg5[%c0_12, %c0_13] : memref<1x128xf32, #tpu.memory_space<vmem>>, vector<1x128xf32>
      %14 = vector.broadcast %13 : vector<1x128xf32> to vector<16x128xf32>
      %15 = arith.addf %12, %14 : vector<16x128xf32>
      %c0_14 = arith.constant 0 : index
      %c0_15 = arith.constant 0 : index
      %16 = vector.load %arg6[%c0_14, %c0_15] : memref<16x128xf32, #tpu.memory_space<vmem>>, vector<16x128xf32>
      tpu.vector_store %arg6[%c0_14, %c0_15], %15 {strides = array<i32>} : memref<16x128xf32, #tpu.memory_space<vmem>>, vector<16x128xf32>,
    } else {
    }
    return
  }
  func.func @transform_0(%arg0: i32, %arg1: i32, %arg2: i32) -> (i32, i32) {
    %c0_i32 = arith.constant 0 : i32
    return %arg0, %arg2 : i32, i32
  }
  func.func @transform_1(%arg0: i32, %arg1: i32, %arg2: i32) -> (i32, i32) {
    %c0_i32 = arith.constant 0 : i32
    return %arg2, %arg1 : i32, i32
  }
  func.func @transform_2(%arg0: i32, %arg1: i32, %arg2: i32) -> (i32, i32) {
    %c0_i32 = arith.constant 0 : i32
    %c0_i32_0 = arith.constant 0 : i32
    return %c0_i32, %arg1 : i32, i32
  }
  func.func @transform_3(%arg0: i32, %arg1: i32, %arg2: i32) -> (i32, i32) {
    %c0_i32 = arith.constant 0 : i32
    return %arg0, %arg1 : i32, i32
  }
}

</mosaic_0001>

<bundles_post_ra>
// kernel: lang_model_rnn_forward.9
= control target key start
LH: loop header
LB: loop body
LE: loop exit
PB: predicated region body
PF: predicated region fallthrough
CT: control target
= control target key end

     0   :  { %v250_v1 = vmov 0.0   ;;  %vm251_vm0 = vmmov 0   ;;  %s317_s0 = inlined_call_operand.vmem [shape: bf16[16,128], index: 0, kind: input, shape index: {}]   ;;  %s318_s1 = inlined_call_operand.vmem [shape: bf16[128,128], index: 1, kind: input, shape index: {}]   ;;  %s319_s2 = inlined_call_operand.vmem [shape: f32[1,128], index: 2, kind: input, shape index: {}]   ;;  %s320_s3 = inlined_call_operand.hbm [shape: f32[16,128], index: 3, kind: output, shape index: {}]  }
   0x1   :  { %v217_v0 = vld [vmem:[%s318_s1] sm:$0xff]   ;;  %192 = vmatprep.subr.bf16.mxu0 %v250_v1  ;;  %v218_v2 = vld [vmem:[%s318_s1 + $0x8] sm:$0xff]   ;;  %208 = vmatprep.mubr.msk.bf16.mxu0 %vm251_vm0, %v250_v1  ;;  %v219_v3 = vld [vmem:[%s318_s1 + $0x10] sm:$0xff]  }
   0x2   :  { %193 = vmatpush3.bf16.msra.mxu0 %v217_v0 }
   0x3   :  { %194 = vmatprep.subr.bf16.mxu0 %v250_v1 }
   0x6   :  { %195 = vmatpush3.bf16.msra.mxu0 %v218_v2 }
   0x7   :  { %196 = vmatprep.subr.bf16.mxu0 %v250_v1 }
   0x8   :  { %8 = vsyncpa [#allocation4], 0  ;;  %v220_v4 = vld [vmem:[%s318_s1 + $0x18] sm:$0xff]   ;;  %v221_v5 = vld [vmem:[%s318_s1 + $0x20] sm:$0xff]   ;;  %s252_s5 = smov [#allocation3]  }
   0x9   :  { %v222_v6 = vld [vmem:[%s318_s1 + $0x28] sm:$0xff]   ;;  %v223_v7 = vld [vmem:[%s318_s1 + $0x30] sm:$0xff]   ;;  %v224_v8 = vld [vmem:[%s318_s1 + $0x38] sm:$0xff]   ;;  %s162_s6 = sshll.u32 %s252_s5, 4  ;;  %s163_s6 = int_to_ptr.vmem [resolvable:$true] %s162_s6 }
   0xa   :  { %197 = vmatpush3.bf16.msra.mxu0 %v219_v3  ;;  %v225_v9 = vld [vmem:[%s317_s0] sm:$0xff]   ;;  %s226_s1 = scalar_lea.vmem %s163_s6, 256  ;;  %p231_p1 = scmp.lt.s32.totalorder %s163_s6, %s163_s6 }
   0xb   :  { %198 = vmatprep.subr.bf16.mxu0 %v250_v1  ;;  %v182_v10 = vld [vmem:[%s319_s2] ss:$0 sm:$0xff]  ;;  %p227_p0 = scmp.ne.s32.totalorder %s163_s6, %s226_s1  ;;  %p232_p2 = scmp.lt.s32.totalorder %s226_s1, %s226_s1 }
   0xd   :  { %p233_p3 = por %p232_p2, %p231_p1 }
   0xe   :  { %199 = vmatpush3.bf16.msra.mxu0 %v220_v4 }
   0xf   :  { %200 = vmatprep.subr.bf16.mxu0 %v250_v1  ;;  %p234_p4 = pnand %p233_p3, %p227_p0 }
  0x12   :  { %201 = vmatpush3.bf16.msra.mxu0 %v221_v5 }
  0x13   :  { %202 = vmatprep.subr.bf16.mxu0 %v250_v1 }
  0x16   :  { %203 = vmatpush3.bf16.msra.mxu0 %v222_v6 }
  0x17   :  { %204 = vmatprep.subr.bf16.mxu0 %v250_v1 }
  0x1a   :  { %205 = vmatpush3.bf16.msra.mxu0 %v223_v7 }
  0x1b   :  { %206 = vmatprep.subr.bf16.mxu0 %v250_v1 }
  0x1e   :  { %207 = vmatpush3.bf16.msra.mxu0 %v224_v8 }
  0x21   :  { %209 = vmatmul.mubr.bf16.vlgmr.msra.gmra.mrb[0].mxu0 %v225_v9 }
  0xf4   :  { %v130_v11 = vpop.f32.mrb[0].mxu0 }
  0xf5   :  { %v153_v12 = vadd.f32 %v182_v10, %v130_v11  ;;  %v210_v13 = vpop.f32.mrb[1].mxu0 }
  0xf6   :  { %v133_v14 = vpop.f32.mrb[2].mxu0 }
  0xf7   :  { %155 = vst [vmem:[#allocation3] sm:$0xff] %v153_v12  ;;  %v154_v15 = vadd.f32 %v182_v10, %v133_v14  ;;  %v211_v16 = vpop.f32.mrb[3].mxu0 }
  0xf9   :  { %156 = vst [vmem:[#allocation3 + $0x8] sm:$0xff] %v154_v15 }
  0xfa   :  { %237 = shalt.err (!%p234_p4)
}
  0xfb   :  { %s238_s7 = scalar_lea.hbm %s320_s3, 256 }
  0xfc   :  { %p239_p5 = scmp.ne.s32.totalorder %s320_s3, %s238_s7  ;;  %p242_p6 = scmp.lt.u32.totalorder %s238_s7, %s320_s3 }
  0xfe   :  { %p244_p7 = pnand %p242_p6, %p239_p5 }
 0x100   :  { %247 = shalt.err (!%p244_p7)
}
 0x101   :  { %s253_s12 = smov 128   ;;  %s254_s13 = smov 8  }
 0x102   :  { %168 = dma.vmem_to_hbm [thread:$0]  %s163_s6, 256, %s320_s3, [#allocation4], %s253_s12, %s253_s12, %s254_s13  }
 0x103   :  { %248 = dma.done.wait [#allocation4], 256  }
 0x104   :  { %249 = vsyncadd [#allocation4], 4294967040 }
 0x105   :  { %172 = vsyncpa [#allocation4], 1 }

// kernel: lang_model_rnn_forward.5
= control target key start
LH: loop header
LB: loop body
LE: loop exit
PB: predicated region body
PF: predicated region fallthrough
CT: control target
= control target key end

     0   :  { %v843_v1 = vmov 0   ;;  %v554_v37 = vlaneseq  ;;  %s1071_s1 = inlined_call_operand.vmem [shape: bf16[128,512], index: 1, kind: input, shape index: {}]   ;;  %s1072_s0 = inlined_call_operand.vmem [shape: bf16[64,128], index: 0, kind: input, shape index: {}]   ;;  %s1073_s2 = inlined_call_operand.vmem [shape: f32[1,512], index: 2, kind: input, shape index: {}]   ;;  %s1074_s3 = inlined_call_operand.vmem [shape: bf16[64,512], index: 3, kind: output, shape index: {}]  }
   0x1   :  { %v791_v0 = vld [vmem:[%s1071_s1 + $0x4] ss:$16 sps:$4 sm:$0xff]   ;;  %339 = vmatprep.mubr.bf16.mxu0 %v843_v1  ;;  %412 = vmatprep.mubr.bf16.mxu1 %v843_v1  ;;  %v793_v2 = vld [vmem:[%s1071_s1 + $0xc] ss:$16 sps:$4 sm:$0xff]   ;;  %v795_v3 = vld [vmem:[%s1071_s1] ss:$16 sps:$4 sm:$0xff]  }
   0x2   :  { %307 = vmatprep.subr.bf16.mxu0 %v791_v0  ;;  %v796_v4 = vld [vmem:[%s1071_s1 + $0x8] ss:$16 sps:$4 sm:$0xff]   ;;  %380 = vmatprep.subr.bf16.mxu1 %v793_v2  ;;  %v797_v5 = vld [vmem:[%s1071_s1 + $0x24] ss:$16 sps:$4 sm:$0xff]   ;;  %v799_v6 = vld [vmem:[%s1071_s1 + $0x2c] ss:$16 sps:$4 sm:$0xff]  }
   0x3   :  { %308 = vmatpush1.bf16.msra.mxu0 %v795_v3  ;;  %381 = vmatpush1.bf16.msra.mxu1 %v796_v4  ;;  %v801_v7 = vld [vmem:[%s1071_s1 + $0x20] ss:$16 sps:$4 sm:$0xff]   ;;  %v802_v8 = vld [vmem:[%s1071_s1 + $0x28] ss:$16 sps:$4 sm:$0xff]   ;;  %v803_v9 = vld [vmem:[%s1071_s1 + $0x44] ss:$16 sps:$4 sm:$0xff]  }
   0x4   :  { %309 = vmatprep.subr.bf16.mxu0 %v797_v5  ;;  %382 = vmatprep.subr.bf16.mxu1 %v799_v6  ;;  %v805_v10 = vld [vmem:[%s1071_s1 + $0x4c] ss:$16 sps:$4 sm:$0xff]   ;;  %v807_v11 = vld [vmem:[%s1071_s1 + $0x40] ss:$16 sps:$4 sm:$0xff]   ;;  %v808_v12 = vld [vmem:[%s1071_s1 + $0x48] ss:$16 sps:$4 sm:$0xff]  }
   0x5   :  { %v809_v13 = vld [vmem:[%s1071_s1 + $0x64] ss:$16 sps:$4 sm:$0xff]   ;;  %v811_v14 = vld [vmem:[%s1071_s1 + $0x6c] ss:$16 sps:$4 sm:$0xff]   ;;  %v813_v15 = vld [vmem:[%s1071_s1 + $0x60] ss:$16 sps:$4 sm:$0xff]  }
   0x6   :  { %v814_v16 = vld [vmem:[%s1071_s1 + $0x68] ss:$16 sps:$4 sm:$0xff]   ;;  %v815_v17 = vld [vmem:[%s1071_s1 + $0x84] ss:$16 sps:$4 sm:$0xff]   ;;  %v817_v18 = vld [vmem:[%s1071_s1 + $0x8c] ss:$16 sps:$4 sm:$0xff]  }
   0x7   :  { %310 = vmatpush1.bf16.msra.mxu0 %v801_v7  ;;  %383 = vmatpush1.bf16.msra.mxu1 %v802_v8  ;;  %v819_v19 = vld [vmem:[%s1071_s1 + $0x80] ss:$16 sps:$4 sm:$0xff]   ;;  %v820_v20 = vld [vmem:[%s1071_s1 + $0x88] ss:$16 sps:$4 sm:$0xff]   ;;  %v821_v21 = vld [vmem:[%s1071_s1 + $0xa4] ss:$16 sps:$4 sm:$0xff]  }
   0x8   :  { %311 = vmatprep.subr.bf16.mxu0 %v803_v9  ;;  %384 = vmatprep.subr.bf16.mxu1 %v805_v10  ;;  %v823_v22 = vld [vmem:[%s1071_s1 + $0xac] ss:$16 sps:$4 sm:$0xff]   ;;  %v825_v23 = vld [vmem:[%s1071_s1 + $0xa0] ss:$16 sps:$4 sm:$0xff]   ;;  %v826_v24 = vld [vmem:[%s1071_s1 + $0xa8] ss:$16 sps:$4 sm:$0xff]  }
   0x9   :  { %v827_v25 = vld [vmem:[%s1071_s1 + $0xc4] ss:$16 sps:$4 sm:$0xff]   ;;  %v829_v26 = vld [vmem:[%s1071_s1 + $0xcc] ss:$16 sps:$4 sm:$0xff]   ;;  %v831_v27 = vld [vmem:[%s1071_s1 + $0xc0] ss:$16 sps:$4 sm:$0xff]  }
   0xa   :  { %v832_v28 = vld [vmem:[%s1071_s1 + $0xc8] ss:$16 sps:$4 sm:$0xff]   ;;  %v833_v29 = vld [vmem:[%s1071_s1 + $0xe4] ss:$16 sps:$4 sm:$0xff]   ;;  %v835_v30 = vld [vmem:[%s1071_s1 + $0xec] ss:$16 sps:$4 sm:$0xff]  }
   0xb   :  { %312 = vmatpush1.bf16.msra.mxu0 %v807_v11  ;;  %385 = vmatpush1.bf16.msra.mxu1 %v808_v12  ;;  %v837_v31 = vld [vmem:[%s1071_s1 + $0xe0] ss:$16 sps:$4 sm:$0xff]   ;;  %v838_v32 = vld [vmem:[%s1071_s1 + $0xe8] ss:$16 sps:$4 sm:$0xff]   ;;  %v555_v38 = vshrl.u32 %v554_v37, 7 }
   0xc   :  { %313 = vmatprep.subr.bf16.mxu0 %v809_v13  ;;  %386 = vmatprep.subr.bf16.mxu1 %v811_v14  ;;  %v839_v33 = vld [vmem:[%s1072_s0] sm:$0xff]   ;;  %v840_v34 = vld [vmem:[%s1072_s0 + $0x8] sm:$0xff]   ;;  %v841_v35 = vld [vmem:[%s1072_s0 + $0x10] sm:$0xff]  }
   0xd   :  { %v842_v36 = vld [vmem:[%s1072_s0 + $0x18] sm:$0xff]   ;;  %v556_v39 = vsub.s32 0, %v555_v38  ;;  %v564_v40 = vsub.s32 2, %v555_v38  ;;  %v552_v41 = vld [vmem:[%s1073_s2] sm:$0xf]  ;;  %v560_v42 = vsub.s32 1, %v555_v38 }
   0xe   :  { %v568_v43 = vsub.s32 3, %v555_v38 }
   0xf   :  { %314 = vmatpush1.bf16.msra.mxu0 %v813_v15  ;;  %387 = vmatpush1.bf16.msra.mxu1 %v814_v16  ;;  %v983_v44 = vrot.slane %v552_v41, %v556_v39  ;;  %v985_v45 = vrot.slane %v552_v41, %v564_v40  ;;  %v987_v46 = vrot.slane %v552_v41, %v560_v42 }
  0x10   :  { %315 = vmatprep.subr.bf16.mxu0 %v815_v17  ;;  %388 = vmatprep.subr.bf16.mxu1 %v817_v18  ;;  %v989_v47 = vrot.slane %v552_v41, %v568_v43 }
  0x13   :  { %316 = vmatpush1.bf16.msra.mxu0 %v819_v19  ;;  %389 = vmatpush1.bf16.msra.mxu1 %v820_v20 }
  0x14   :  { %317 = vmatprep.subr.bf16.mxu0 %v821_v21  ;;  %390 = vmatprep.subr.bf16.mxu1 %v823_v22 }
  0x17   :  { %318 = vmatpush1.bf16.msra.mxu0 %v825_v23  ;;  %391 = vmatpush1.bf16.msra.mxu1 %v826_v24 }
  0x18   :  { %319 = vmatprep.subr.bf16.mxu0 %v827_v25  ;;  %392 = vmatprep.subr.bf16.mxu1 %v829_v26 }
  0x1b   :  { %320 = vmatpush1.bf16.msra.mxu0 %v831_v27  ;;  %393 = vmatpush1.bf16.msra.mxu1 %v832_v28 }
  0x1c   :  { %321 = vmatprep.subr.bf16.mxu0 %v833_v29  ;;  %394 = vmatprep.subr.bf16.mxu1 %v835_v30 }
  0x1f   :  { %322 = vmatpush1.bf16.msra.mxu0 %v837_v31  ;;  %395 = vmatpush1.bf16.msra.mxu1 %v838_v32 }
  0x22   :  { %340 = vmatmul.mubr.bf16.vlgmr.msra.gmra.mrb[0].mxu0 %v839_v33  ;;  %413 = vmatmul.mubr.bf16.vlgmr.msra.gmra.mrb[0].mxu1 %v839_v33 }
  0x23   :  { %349 = vmatprep.mubr.bf16.mxu0 %v843_v1  ;;  %422 = vmatprep.mubr.bf16.mxu1 %v843_v1 }
  0x2a   :  { %350 = vmatmul.mubr.bf16.gmra.mrb[4].mxu0 %v840_v34  ;;  %423 = vmatmul.mubr.bf16.gmra.mrb[4].mxu1 %v840_v34 }
  0x2b   :  { %359 = vmatprep.mubr.bf16.mxu0 %v843_v1  ;;  %432 = vmatprep.mubr.bf16.mxu1 %v843_v1 }
  0x32   :  { %360 = vmatmul.mubr.bf16.gmra.mrb[8].mxu0 %v841_v35  ;;  %433 = vmatmul.mubr.bf16.gmra.mrb[8].mxu1 %v841_v35 }
  0x33   :  { %369 = vmatprep.mubr.bf16.mxu0 %v843_v1  ;;  %442 = vmatprep.mubr.bf16.mxu1 %v843_v1 }
  0x3a   :  { %370 = vmatmul.mubr.bf16.gmra.mrb[12].mxu0 %v842_v36  ;;  %443 = vmatmul.mubr.bf16.gmra.mrb[12].mxu1 %v842_v36 }
  0xf5   :  { %v341_v48 = vpop.f32.mrb[0].mxu0  ;;  %v414_v49 = vpop.f32.mrb[0].mxu1 }
  0xf6   :  { %v574_v50 = vadd.f32 %v983_v44, %v341_v48  ;;  %v576_v51 = vadd.f32 %v985_v45, %v414_v49  ;;  %v343_v52 = vpop.f32.mrb[1].mxu0  ;;  %v416_v53 = vpop.f32.mrb[1].mxu1 }
  0xf7   :  { %v575_v54 = vadd.f32 %v987_v46, %v343_v52  ;;  %v577_v55 = vadd.f32 %v989_v47, %v416_v53  ;;  %v345_v56 = vpop.f32.mrb[2].mxu0  ;;  %v418_v57 = vpop.f32.mrb[2].mxu1 }
  0xf8   :  { %v578_v58 = vadd.f32 %v983_v44, %v345_v56  ;;  %v580_v59 = vadd.f32 %v985_v45, %v418_v57  ;;  %v347_v60 = vpop.f32.mrb[3].mxu0  ;;  %v420_v61 = vpop.f32.mrb[3].mxu1 }
  0xf9   :  { %v774_v62 = vpack.c.bf16 %v575_v54, %v574_v50  ;;  %v775_v63 = vpack.c.bf16 %v577_v55, %v576_v51  ;;  %v579_v0 = vadd.f32 %v987_v46, %v347_v60  ;;  %v581_v1 = vadd.f32 %v989_v47, %v420_v61 }
  0xfb   :  { %702 = vst [vmem:[%s1074_s3] sm:$0xff] %v774_v62  ;;  %703 = vst [vmem:[%s1074_s3 + $0x8] sm:$0xff] %v775_v63  ;;  %v776_v2 = vpack.c.bf16 %v579_v0, %v578_v58  ;;  %v777_v3 = vpack.c.bf16 %v581_v1, %v580_v59 }
  0xfd   :  { %704 = vst [vmem:[%s1074_s3 + $0x10] sm:$0xff] %v776_v2  ;;  %705 = vst [vmem:[%s1074_s3 + $0x18] sm:$0xff] %v777_v3  ;;  %v351_v4 = vpop.f32.mrb[4].mxu0  ;;  %v424_v5 = vpop.f32.mrb[4].mxu1 }
  0xfe   :  { %v582_v6 = vadd.f32 %v983_v44, %v351_v4  ;;  %v584_v7 = vadd.f32 %v985_v45, %v424_v5  ;;  %v353_v8 = vpop.f32.mrb[5].mxu0  ;;  %v426_v9 = vpop.f32.mrb[5].mxu1 }
  0xff   :  { %v583_v10 = vadd.f32 %v987_v46, %v353_v8  ;;  %v585_v11 = vadd.f32 %v989_v47, %v426_v9  ;;  %v355_v12 = vpop.f32.mrb[6].mxu0  ;;  %v428_v13 = vpop.f32.mrb[6].mxu1 }
 0x100   :  { %v586_v14 = vadd.f32 %v983_v44, %v355_v12  ;;  %v588_v15 = vadd.f32 %v985_v45, %v428_v13  ;;  %v357_v16 = vpop.f32.mrb[7].mxu0  ;;  %v430_v17 = vpop.f32.mrb[7].mxu1 }
 0x101   :  { %v778_v18 = vpack.c.bf16 %v583_v10, %v582_v6  ;;  %v779_v19 = vpack.c.bf16 %v585_v11, %v584_v7  ;;  %v587_v20 = vadd.f32 %v987_v46, %v357_v16  ;;  %v589_v21 = vadd.f32 %v989_v47, %v430_v17 }
 0x103   :  { %706 = vst [vmem:[%s1074_s3 + $0x20] sm:$0xff] %v778_v18  ;;  %707 = vst [vmem:[%s1074_s3 + $0x28] sm:$0xff] %v779_v19  ;;  %v780_v22 = vpack.c.bf16 %v587_v20, %v586_v14  ;;  %v781_v23 = vpack.c.bf16 %v589_v21, %v588_v15 }
 0x105   :  { %708 = vst [vmem:[%s1074_s3 + $0x30] sm:$0xff] %v780_v22  ;;  %709 = vst [vmem:[%s1074_s3 + $0x38] sm:$0xff] %v781_v23  ;;  %v361_v24 = vpop.f32.mrb[8].mxu0  ;;  %v434_v25 = vpop.f32.mrb[8].mxu1 }
 0x106   :  { %v590_v26 = vadd.f32 %v983_v44, %v361_v24  ;;  %v592_v27 = vadd.f32 %v985_v45, %v434_v25  ;;  %v363_v28 = vpop.f32.mrb[9].mxu0  ;;  %v436_v29 = vpop.f32.mrb[9].mxu1 }
 0x107   :  { %v591_v30 = vadd.f32 %v987_v46, %v363_v28  ;;  %v593_v31 = vadd.f32 %v989_v47, %v436_v29  ;;  %v365_v32 = vpop.f32.mrb[10].mxu0  ;;  %v438_v33 = vpop.f32.mrb[10].mxu1 }
 0x108   :  { %v594_v34 = vadd.f32 %v983_v44, %v365_v32  ;;  %v596_v35 = vadd.f32 %v985_v45, %v438_v33  ;;  %v367_v36 = vpop.f32.mrb[11].mxu0  ;;  %v440_v37 = vpop.f32.mrb[11].mxu1 }
 0x109   :  { %v782_v38 = vpack.c.bf16 %v591_v30, %v590_v26  ;;  %v783_v39 = vpack.c.bf16 %v593_v31, %v592_v27  ;;  %v595_v40 = vadd.f32 %v987_v46, %v367_v36  ;;  %v597_v41 = vadd.f32 %v989_v47, %v440_v37 }
 0x10b   :  { %710 = vst [vmem:[%s1074_s3 + $0x40] sm:$0xff] %v782_v38  ;;  %711 = vst [vmem:[%s1074_s3 + $0x48] sm:$0xff] %v783_v39  ;;  %v784_v42 = vpack.c.bf16 %v595_v40, %v594_v34  ;;  %v785_v43 = vpack.c.bf16 %v597_v41, %v596_v35 }
 0x10d   :  { %712 = vst [vmem:[%s1074_s3 + $0x50] sm:$0xff] %v784_v42  ;;  %713 = vst [vmem:[%s1074_s3 + $0x58] sm:$0xff] %v785_v43  ;;  %v371_v48 = vpop.f32.mrb[12].mxu0  ;;  %v444_v49 = vpop.f32.mrb[12].mxu1 }
 0x10e   :  { %v598_v50 = vadd.f32 %v983_v44, %v371_v48  ;;  %v600_v51 = vadd.f32 %v985_v45, %v444_v49  ;;  %v373_v52 = vpop.f32.mrb[13].mxu0  ;;  %v446_v53 = vpop.f32.mrb[13].mxu1 }
 0x10f   :  { %v599_v54 = vadd.f32 %v987_v46, %v373_v52  ;;  %v601_v55 = vadd.f32 %v989_v47, %v446_v53  ;;  %v375_v56 = vpop.f32.mrb[14].mxu0  ;;  %v448_v57 = vpop.f32.mrb[14].mxu1 }
 0x110   :  { %v602_v58 = vadd.f32 %v983_v44, %v375_v56  ;;  %v604_v59 = vadd.f32 %v985_v45, %v448_v57  ;;  %v377_v60 = vpop.f32.mrb[15].mxu0  ;;  %v450_v61 = vpop.f32.mrb[15].mxu1 }
 0x111   :  { %v786_v62 = vpack.c.bf16 %v599_v54, %v598_v50  ;;  %v787_v63 = vpack.c.bf16 %v601_v55, %v600_v51  ;;  %v603_v0 = vadd.f32 %v987_v46, %v377_v60  ;;  %v605_v1 = vadd.f32 %v989_v47, %v450_v61 }
 0x113   :  { %714 = vst [vmem:[%s1074_s3 + $0x60] sm:$0xff] %v786_v62  ;;  %715 = vst [vmem:[%s1074_s3 + $0x68] sm:$0xff] %v787_v63  ;;  %v788_v2 = vpack.c.bf16 %v603_v0, %v602_v58  ;;  %v789_v44 = vpack.c.bf16 %v605_v1, %v604_v59 }
 0x115   :  { %716 = vst [vmem:[%s1074_s3 + $0x70] sm:$0xff] %v788_v2  ;;  %717 = vst [vmem:[%s1074_s3 + $0x78] sm:$0xff] %v789_v44 }

// kernel: lang_model_rnn_forward.6
= control target key start
LH: loop header
LB: loop body
LE: loop exit
PB: predicated region body
PF: predicated region fallthrough
CT: control target
= control target key end

     0   :  { %s2527_s0 = inlined_call_operand.vmem [shape: bf16[8,8,512], index: 0, kind: input, shape index: {}]   ;;  %s2528_s1 = inlined_call_operand.vmem [shape: bf16[128,512], index: 1, kind: input, shape index: {}]   ;;  %s2529_s2 = inlined_call_operand.vmem [shape: f32[8,128], index: 2, kind: input, shape index: {}]   ;;  %s2530_s3 = inlined_call_operand.vmem [shape: f32[8,128], index: 3, kind: input, shape index: {}]   ;;  %s2531_s4 = inlined_call_operand.vmem [shape: bf16[8,8,128], index: 4, kind: output, shape index: {0}]   ;;  %s2532_s5 = inlined_call_operand.vmem [shape: f32[8,128], index: 5, kind: output, shape index: {1}]   ;;  %s2533_s6 = inlined_call_operand.vmem [shape: f32[8,128], index: 6, kind: output, shape index: {2}]  }
   0x1   :  { %v40_v0 = vld [vmem:[%s2528_s1] sm:$0xf]  ;;  %v42_v1 = vld [vmem:[%s2528_s1 + $0x10] sm:$0xf]  ;;  %v44_v2 = vld [vmem:[%s2528_s1 + $0x4] sm:$0xf] }
   0x2   :  { %41 = vst [vmem:[#allocation2] sm:$0xf] %v40_v0  ;;  %43 = vst [vmem:[#allocation2 + $0x4] sm:$0xf] %v42_v1  ;;  %v46_v3 = vld [vmem:[%s2528_s1 + $0x14] sm:$0xf] }
   0x3   :  { %45 = vst [vmem:[#allocation2 + $0x8] sm:$0xf] %v44_v2  ;;  %v48_v4 = vld [vmem:[%s2528_s1 + $0x8] sm:$0xf]  ;;  %v50_v5 = vld [vmem:[%s2528_s1 + $0x18] sm:$0xf] }
   0x4   :  { %47 = vst [vmem:[#allocation2 + $0xc] sm:$0xf] %v46_v3  ;;  %49 = vst [vmem:[#allocation2 + $0x10] sm:$0xf] %v48_v4  ;;  %v52_v6 = vld [vmem:[%s2528_s1 + $0xc] sm:$0xf] }
   0x5   :  { %51 = vst [vmem:[#allocation2 + $0x14] sm:$0xf] %v50_v5  ;;  %v54_v7 = vld [vmem:[%s2528_s1 + $0x1c] sm:$0xff]   ;;  %v58_v8 = vld [vmem:[%s2528_s1 + $0x30] sm:$0xf] }
   0x6   :  { %53 = vst [vmem:[#allocation2 + $0x18] sm:$0xf] %v52_v6  ;;  %55 = vst [vmem:[#allocation2 + $0x1c] sm:$0xff] %v54_v7   ;;  %v60_v9 = vld [vmem:[%s2528_s1 + $0x24] sm:$0xf]  ;;  %v70_v14 = vld [vmem:[%s2528_s1 + $0x3c] sm:$0xff]  }
   0x7   :  { %59 = vst [vmem:[#allocation2 + $0x24] sm:$0xf] %v58_v8  ;;  %v62_v10 = vld [vmem:[%s2528_s1 + $0x34] sm:$0xf]  ;;  %v64_v11 = vld [vmem:[%s2528_s1 + $0x28] sm:$0xf] }
   0x8   :  { %61 = vst [vmem:[#allocation2 + $0x28] sm:$0xf] %v60_v9  ;;  %63 = vst [vmem:[#allocation2 + $0x2c] sm:$0xf] %v62_v10  ;;  %v66_v12 = vld [vmem:[%s2528_s1 + $0x38] sm:$0xf] }
   0x9   :  { %65 = vst [vmem:[#allocation2 + $0x30] sm:$0xf] %v64_v11  ;;  %v68_v13 = vld [vmem:[%s2528_s1 + $0x2c] sm:$0xf]  ;;  %67 = vst [vmem:[#allocation2 + $0x34] sm:$0xf] %v66_v12 }
   0xa   :  { %69 = vst [vmem:[#allocation2 + $0x38] sm:$0xf] %v68_v13  ;;  %71 = vst [vmem:[#allocation2 + $0x3c] sm:$0xff] %v70_v14   ;;  %v74_v15 = vld [vmem:[%s2528_s1 + $0x50] sm:$0xf]  ;;  %v86_v21 = vld [vmem:[%s2528_s1 + $0x5c] sm:$0xff]  }
   0xb   :  { %v76_v16 = vld [vmem:[%s2528_s1 + $0x44] sm:$0xf]  ;;  %v78_v17 = vld [vmem:[%s2528_s1 + $0x54] sm:$0xf]  ;;  %75 = vst [vmem:[#allocation2 + $0x44] sm:$0xf] %v74_v15 }
   0xc   :  { %77 = vst [vmem:[#allocation2 + $0x48] sm:$0xf] %v76_v16  ;;  %79 = vst [vmem:[#allocation2 + $0x4c] sm:$0xf] %v78_v17  ;;  %v80_v18 = vld [vmem:[%s2528_s1 + $0x48] sm:$0xf] }
   0xd   :  { %v82_v19 = vld [vmem:[%s2528_s1 + $0x58] sm:$0xf]  ;;  %v84_v20 = vld [vmem:[%s2528_s1 + $0x4c] sm:$0xf]  ;;  %81 = vst [vmem:[#allocation2 + $0x50] sm:$0xf] %v80_v18 }
   0xe   :  { %83 = vst [vmem:[#allocation2 + $0x54] sm:$0xf] %v82_v19  ;;  %85 = vst [vmem:[#allocation2 + $0x58] sm:$0xf] %v84_v20  ;;  %v90_v22 = vld [vmem:[%s2528_s1 + $0x70] sm:$0xf] }
   0xf   :  { %v92_v23 = vld [vmem:[%s2528_s1 + $0x64] sm:$0xf]  ;;  %87 = vst [vmem:[#allocation2 + $0x5c] sm:$0xff] %v86_v21   ;;  %91 = vst [vmem:[#allocation2 + $0x64] sm:$0xf] %v90_v22  ;;  %v102_v28 = vld [vmem:[%s2528_s1 + $0x7c] sm:$0xff]  }
  0x10   :  { %93 = vst [vmem:[#allocation2 + $0x68] sm:$0xf] %v92_v23  ;;  %v94_v24 = vld [vmem:[%s2528_s1 + $0x74] sm:$0xf]  ;;  %v96_v25 = vld [vmem:[%s2528_s1 + $0x68] sm:$0xf] }
  0x11   :  { %v98_v26 = vld [vmem:[%s2528_s1 + $0x78] sm:$0xf]  ;;  %95 = vst [vmem:[#allocation2 + $0x6c] sm:$0xf] %v94_v24  ;;  %97 = vst [vmem:[#allocation2 + $0x70] sm:$0xf] %v96_v25 }
  0x12   :  { %99 = vst [vmem:[#allocation2 + $0x74] sm:$0xf] %v98_v26  ;;  %v100_v27 = vld [vmem:[%s2528_s1 + $0x6c] sm:$0xf]  ;;  %v106_v29 = vld [vmem:[%s2528_s1 + $0x90] sm:$0xf] }
  0x13   :  { %101 = vst [vmem:[#allocation2 + $0x78] sm:$0xf] %v100_v27  ;;  %103 = vst [vmem:[#allocation2 + $0x7c] sm:$0xff] %v102_v28   ;;  %v108_v30 = vld [vmem:[%s2528_s1 + $0x84] sm:$0xf]  ;;  %v118_v35 = vld [vmem:[%s2528_s1 + $0x9c] sm:$0xff]  }
  0x14   :  { %107 = vst [vmem:[#allocation2 + $0x84] sm:$0xf] %v106_v29  ;;  %v110_v31 = vld [vmem:[%s2528_s1 + $0x94] sm:$0xf]  ;;  %v112_v32 = vld [vmem:[%s2528_s1 + $0x88] sm:$0xf] }
  0x15   :  { %109 = vst [vmem:[#allocation2 + $0x88] sm:$0xf] %v108_v30  ;;  %111 = vst [vmem:[#allocation2 + $0x8c] sm:$0xf] %v110_v31  ;;  %v114_v33 = vld [vmem:[%s2528_s1 + $0x98] sm:$0xf] }
  0x16   :  { %113 = vst [vmem:[#allocation2 + $0x90] sm:$0xf] %v112_v32  ;;  %v116_v34 = vld [vmem:[%s2528_s1 + $0x8c] sm:$0xf]  ;;  %115 = vst [vmem:[#allocation2 + $0x94] sm:$0xf] %v114_v33 }
  0x17   :  { %117 = vst [vmem:[#allocation2 + $0x98] sm:$0xf] %v116_v34  ;;  %119 = vst [vmem:[#allocation2 + $0x9c] sm:$0xff] %v118_v35   ;;  %v122_v36 = vld [vmem:[%s2528_s1 + $0xb0] sm:$0xf]  ;;  %v134_v42 = vld [vmem:[%s2528_s1 + $0xbc] sm:$0xff]  }
  0x18   :  { %v124_v37 = vld [vmem:[%s2528_s1 + $0xa4] sm:$0xf]  ;;  %v126_v38 = vld [vmem:[%s2528_s1 + $0xb4] sm:$0xf]  ;;  %123 = vst [vmem:[#allocation2 + $0xa4] sm:$0xf] %v122_v36 }
  0x19   :  { %125 = vst [vmem:[#allocation2 + $0xa8] sm:$0xf] %v124_v37  ;;  %127 = vst [vmem:[#allocation2 + $0xac] sm:$0xf] %v126_v38  ;;  %v128_v39 = vld [vmem:[%s2528_s1 + $0xa8] sm:$0xf] }
  0x1a   :  { %v130_v40 = vld [vmem:[%s2528_s1 + $0xb8] sm:$0xf]  ;;  %v132_v41 = vld [vmem:[%s2528_s1 + $0xac] sm:$0xf]  ;;  %129 = vst [vmem:[#allocation2 + $0xb0] sm:$0xf] %v128_v39 }
  0x1b   :  { %131 = vst [vmem:[#allocation2 + $0xb4] sm:$0xf] %v130_v40  ;;  %133 = vst [vmem:[#allocation2 + $0xb8] sm:$0xf] %v132_v41  ;;  %v138_v43 = vld [vmem:[%s2528_s1 + $0xd0] sm:$0xf] }
  0x1c   :  { %v140_v44 = vld [vmem:[%s2528_s1 + $0xc4] sm:$0xf]  ;;  %135 = vst [vmem:[#allocation2 + $0xbc] sm:$0xff] %v134_v42   ;;  %139 = vst [vmem:[#allocation2 + $0xc4] sm:$0xf] %v138_v43  ;;  %v150_v49 = vld [vmem:[%s2528_s1 + $0xdc] sm:$0xff]  }
  0x1d   :  { %141 = vst [vmem:[#allocation2 + $0xc8] sm:$0xf] %v140_v44  ;;  %v142_v45 = vld [vmem:[%s2528_s1 + $0xd4] sm:$0xf]  ;;  %v144_v46 = vld [vmem:[%s2528_s1 + $0xc8] sm:$0xf] }
  0x1e   :  { %v146_v47 = vld [vmem:[%s2528_s1 + $0xd8] sm:$0xf]  ;;  %143 = vst [vmem:[#allocation2 + $0xcc] sm:$0xf] %v142_v45  ;;  %145 = vst [vmem:[#allocation2 + $0xd0] sm:$0xf] %v144_v46 }
  0x1f   :  { %147 = vst [vmem:[#allocation2 + $0xd4] sm:$0xf] %v146_v47  ;;  %v148_v48 = vld [vmem:[%s2528_s1 + $0xcc] sm:$0xf]  ;;  %v154_v50 = vld [vmem:[%s2528_s1 + $0xf0] sm:$0xf] }
  0x20   :  { %149 = vst [vmem:[#allocation2 + $0xd8] sm:$0xf] %v148_v48  ;;  %151 = vst [vmem:[#allocation2 + $0xdc] sm:$0xff] %v150_v49   ;;  %v156_v51 = vld [vmem:[%s2528_s1 + $0xe4] sm:$0xf] }
  0x21   :  { %155 = vst [vmem:[#allocation2 + $0xe4] sm:$0xf] %v154_v50  ;;  %v158_v52 = vld [vmem:[%s2528_s1 + $0xf4] sm:$0xf]  ;;  %v160_v53 = vld [vmem:[%s2528_s1 + $0xe8] sm:$0xf] }
  0x22   :  { %157 = vst [vmem:[#allocation2 + $0xe8] sm:$0xf] %v156_v51  ;;  %159 = vst [vmem:[#allocation2 + $0xec] sm:$0xf] %v158_v52  ;;  %v162_v54 = vld [vmem:[%s2528_s1 + $0xf8] sm:$0xf] }
  0x23   :  { %161 = vst [vmem:[#allocation2 + $0xf0] sm:$0xf] %v160_v53  ;;  %v164_v55 = vld [vmem:[%s2528_s1 + $0xec] sm:$0xf]  ;;  %v166_v56 = vld [vmem:[%s2528_s1 + $0xfc] sm:$0xf] }
  0x24   :  { %163 = vst [vmem:[#allocation2 + $0xf4] sm:$0xf] %v162_v54  ;;  %165 = vst [vmem:[#allocation2 + $0xf8] sm:$0xf] %v164_v55 }
  0x25   :  { %167 = vst [vmem:[#allocation2 + $0xfc] sm:$0xf] %v166_v56 }
  0x26   :  { %326 = vsyncadd [#allocation5], 4096  ;;  %v2015_v57 = vld [vmem:[%s2529_s2] sm:$0xff] }
  0x27   :  { %v2020_v58 = vld [vmem:[%s2530_s3] sm:$0xff] }
  0x28   :  { %1803 = dma.done.wait [#allocation5], 4096 }
  0x29   :  { %1804 = vsyncadd [#allocation5], 4294963200  ;;  %v1805_v59 = vmov 0   ;;  %v2024_v60 = vld [vmem:[#allocation2 + $0x8] sm:$0xff]  ;;  %v2026_v61 = vld [vmem:[#allocation2] sm:$0xff]  ;;  %v342_v27 = vpack.c.bf16 %v2015_v57, %v2015_v57 }
  0x2a   :  { %407 = vmatprep.mubr.bf16.mxu0 %v1805_v59  ;;  %448 = vmatprep.mubr.bf16.mxu1 %v1805_v59  ;;  %v2028_v62 = vld [vmem:[#allocation2 + $0x28] sm:$0xff]  ;;  %v2032_v63 = vld [vmem:[#allocation2 + $0x18] sm:$0xff]  ;;  %v2035_v0 = vld [vmem:[#allocation2 + $0x20] sm:$0xff] }
  0x2b   :  { %375 = vmatprep.subr.bf16.mxu0 %v2024_v60  ;;  %416 = vmatprep.subr.bf16.mxu1 %v2032_v63  ;;  %v2038_v1 = vld [vmem:[#allocation2 + $0x10] sm:$0xff]  ;;  %v2040_v2 = vld [vmem:[#allocation2 + $0x38] sm:$0xff]  ;;  %v2042_v3 = vld [vmem:[#allocation2 + $0x48] sm:$0xff] }
  0x2c   :  { %376 = vmatpush1.bf16.msra.mxu0 %v2026_v61  ;;  %417 = vmatpush1.bf16.msra.mxu1 %v2038_v1  ;;  %v2046_v4 = vld [vmem:[#allocation2 + $0x30] sm:$0xff]  ;;  %v2049_v5 = vld [vmem:[#allocation2 + $0x58] sm:$0xff]  ;;  %v2052_v6 = vld [vmem:[#allocation2 + $0x40] sm:$0xff] }
  0x2d   :  { %377 = vmatprep.subr.bf16.mxu0 %v2028_v62  ;;  %418 = vmatprep.subr.bf16.mxu1 %v2040_v2  ;;  %v2054_v7 = vld [vmem:[#allocation2 + $0x68] sm:$0xff]  ;;  %v2058_v8 = vld [vmem:[#allocation2 + $0x50] sm:$0xff]  ;;  %v2061_v9 = vld [vmem:[#allocation2 + $0x78] sm:$0xff] }
  0x2e   :  { %v2064_v10 = vld [vmem:[#allocation2 + $0x60] sm:$0xff]  ;;  %v2066_v11 = vld [vmem:[#allocation2 + $0x88] sm:$0xff]  ;;  %v2070_v12 = vld [vmem:[#allocation2 + $0x70] sm:$0xff] }
  0x2f   :  { %v2073_v13 = vld [vmem:[#allocation2 + $0x98] sm:$0xff]  ;;  %v2076_v14 = vld [vmem:[#allocation2 + $0x80] sm:$0xff]  ;;  %v2078_v15 = vld [vmem:[#allocation2 + $0xa8] sm:$0xff] }
  0x30   :  { %378 = vmatpush1.bf16.msra.mxu0 %v2035_v0  ;;  %419 = vmatpush1.bf16.msra.mxu1 %v2046_v4  ;;  %v2082_v16 = vld [vmem:[#allocation2 + $0x90] sm:$0xff]  ;;  %v2085_v17 = vld [vmem:[#allocation2 + $0xb8] sm:$0xff]  ;;  %v2088_v18 = vld [vmem:[#allocation2 + $0xa0] sm:$0xff] }
  0x31   :  { %379 = vmatprep.subr.bf16.mxu0 %v2042_v3  ;;  %420 = vmatprep.subr.bf16.mxu1 %v2049_v5  ;;  %v2090_v19 = vld [vmem:[#allocation2 + $0xc8] sm:$0xff]  ;;  %v2094_v20 = vld [vmem:[#allocation2 + $0xb0] sm:$0xff]  ;;  %v2097_v21 = vld [vmem:[#allocation2 + $0xd8] sm:$0xff] }
  0x32   :  { %v2100_v22 = vld [vmem:[#allocation2 + $0xc0] sm:$0xff]  ;;  %v2102_v23 = vld [vmem:[#allocation2 + $0xe8] sm:$0xff]  ;;  %v2106_v24 = vld [vmem:[#allocation2 + $0xd0] sm:$0xff] }
  0x33   :  { %v2109_v25 = vld [vmem:[#allocation2 + $0xf8] sm:$0xff]  ;;  %v2112_v26 = vld [vmem:[#allocation2 + $0xe0] sm:$0xff]  ;;  %v2118_v28 = vld [vmem:[#allocation2 + $0xf0] sm:$0xff] }
  0x34   :  { %380 = vmatpush1.bf16.msra.mxu0 %v2052_v6  ;;  %421 = vmatpush1.bf16.msra.mxu1 %v2058_v8  ;;  %v335_v29 = vld [vmem:[%s2527_s0] sm:$0xff]  ;;  %v336_v33 = vld [vmem:[%s2527_s0 + $0x8] sm:$0xff] }
  0x35   :  { %381 = vmatprep.subr.bf16.mxu0 %v2054_v7  ;;  %422 = vmatprep.subr.bf16.mxu1 %v2061_v9  ;;  %v337_v30 = vunpack.c.l.bf16 %v335_v29  ;;  %v338_v31 = vunpack.c.h.bf16 %v335_v29  ;;  %v340_v41 = vunpack.c.h.bf16 %v336_v33  ;;  %v339_v47 = vunpack.c.l.bf16 %v336_v33 }
  0x38   :  { %382 = vmatpush1.bf16.msra.mxu0 %v2064_v10  ;;  %423 = vmatpush1.bf16.msra.mxu1 %v2070_v12 }
  0x39   :  { %383 = vmatprep.subr.bf16.mxu0 %v2066_v11  ;;  %424 = vmatprep.subr.bf16.mxu1 %v2073_v13 }
  0x3c   :  { %384 = vmatpush1.bf16.msra.mxu0 %v2076_v14  ;;  %425 = vmatpush1.bf16.msra.mxu1 %v2082_v16 }
  0x3d   :  { %385 = vmatprep.subr.bf16.mxu0 %v2078_v15  ;;  %426 = vmatprep.subr.bf16.mxu1 %v2085_v17 }
  0x40   :  { %386 = vmatpush1.bf16.msra.mxu0 %v2088_v18  ;;  %427 = vmatpush1.bf16.msra.mxu1 %v2094_v20 }
  0x41   :  { %387 = vmatprep.subr.bf16.mxu0 %v2090_v19  ;;  %428 = vmatprep.subr.bf16.mxu1 %v2097_v21 }
  0x44   :  { %388 = vmatpush1.bf16.msra.mxu0 %v2100_v22  ;;  %429 = vmatpush1.bf16.msra.mxu1 %v2106_v24 }
  0x45   :  { %389 = vmatprep.subr.bf16.mxu0 %v2102_v23  ;;  %430 = vmatprep.subr.bf16.mxu1 %v2109_v25 }
  0x48   :  { %390 = vmatpush1.bf16.msra.mxu0 %v2112_v26  ;;  %431 = vmatpush1.bf16.msra.mxu1 %v2118_v28 }
  0x49   :  { %531 = vmatprep.subr.bf16.mxu0 %v2024_v60  ;;  %572 = vmatprep.subr.bf16.mxu1 %v2032_v63 }
  0x4b   :  { %408 = vmatmul.mubr.bf16.vlgmr.msra.gmra.mrb[0].mxu0 %v342_v27  ;;  %449 = vmatmul.mubr.bf16.vlgmr.msra.gmra.mrb[0].mxu1 %v342_v27 }
  0x4c   :  { %532 = vmatpush1.bf16.msra.mxu0 %v2026_v61  ;;  %563 = vmatprep.mubr.bf16.mxu0 %v1805_v59 }
  0x4d   :  { %533 = vmatprep.subr.bf16.mxu0 %v2028_v62  ;;  %573 = vmatpush1.bf16.msra.mxu1 %v2038_v1 }
  0x4e   :  { %604 = vmatprep.mubr.bf16.mxu1 %v1805_v59  ;;  %574 = vmatprep.subr.bf16.mxu1 %v2040_v2 }
  0x50   :  { %534 = vmatpush1.bf16.msra.mxu0 %v2035_v0 }
  0x51   :  { %535 = vmatprep.subr.bf16.mxu0 %v2042_v3  ;;  %575 = vmatpush1.bf16.msra.mxu1 %v2046_v4 }
  0x52   :  { %576 = vmatprep.subr.bf16.mxu1 %v2049_v5 }
  0x54   :  { %536 = vmatpush1.bf16.msra.mxu0 %v2052_v6 }
  0x55   :  { %537 = vmatprep.subr.bf16.mxu0 %v2054_v7  ;;  %577 = vmatpush1.bf16.msra.mxu1 %v2058_v8 }
  0x56   :  { %578 = vmatprep.subr.bf16.mxu1 %v2061_v9 }
  0x58   :  { %538 = vmatpush1.bf16.msra.mxu0 %v2064_v10 }
  0x59   :  { %539 = vmatprep.subr.bf16.mxu0 %v2066_v11  ;;  %579 = vmatpush1.bf16.msra.mxu1 %v2070_v12 }
  0x5a   :  { %580 = vmatprep.subr.bf16.mxu1 %v2073_v13 }
  0x5c   :  { %540 = vmatpush1.bf16.msra.mxu0 %v2076_v14 }
  0x5d   :  { %541 = vmatprep.subr.bf16.mxu0 %v2078_v15  ;;  %581 = vmatpush1.bf16.msra.mxu1 %v2082_v16 }
  0x5e   :  { %582 = vmatprep.subr.bf16.mxu1 %v2085_v17 }
  0x60   :  { %542 = vmatpush1.bf16.msra.mxu0 %v2088_v18 }
  0x61   :  { %543 = vmatprep.subr.bf16.mxu0 %v2090_v19  ;;  %583 = vmatpush1.bf16.msra.mxu1 %v2094_v20 }
  0x62   :  { %584 = vmatprep.subr.bf16.mxu1 %v2097_v21 }
  0x64   :  { %544 = vmatpush1.bf16.msra.mxu0 %v2100_v22 }
  0x65   :  { %545 = vmatprep.subr.bf16.mxu0 %v2102_v23  ;;  %585 = vmatpush1.bf16.msra.mxu1 %v2106_v24 }
  0x66   :  { %586 = vmatprep.subr.bf16.mxu1 %v2109_v25 }
  0x68   :  { %546 = vmatpush1.bf16.msra.mxu0 %v2112_v26 }
  0x69   :  { %688 = vmatprep.subr.bf16.mxu0 %v2024_v60  ;;  %587 = vmatpush1.bf16.msra.mxu1 %v2118_v28 }
  0x6a   :  { %729 = vmatprep.subr.bf16.mxu1 %v2032_v63 }
 0x11e   :  { %v409_v32 = vpop.f32.mrb[0].mxu0  ;;  %v450_v38 = vpop.f32.mrb[0].mxu1 }
 0x11f   :  { %v457_v34 = vadd.f32 %v409_v32, %v337_v30  ;;  %v411_v35 = vpop.f32.mrb[1].mxu0  ;;  %v452_v42 = vpop.f32.mrb[1].mxu1  ;;  %v459_v49 = vadd.f32 %v450_v38, %v339_v47 }
 0x120   :  { %v458_v36 = vadd.f32 %v411_v35, %v338_v31  ;;  %v413_v37 = vpop.f32.mrb[2].mxu0  ;;  %v454_v44 = vpop.f32.mrb[2].mxu1  ;;  %v460_v46 = vadd.f32 %v452_v42, %v340_v41  ;;  %v1632_v41 = vld [vmem:[%s2527_s0 + $0x18] sm:$0xff] }
 0x121   :  { %v1628_v39 = vmul.f32 -1.442695, %v457_v34  ;;  %v414_v40 = vpop.f32.mrb[3].mxu0  ;;  %v455_v45 = vpop.f32.mrb[3].mxu1 }
 0x122   :  { %v1629_v43 = vmul.f32 -1.442695, %v458_v36  ;;  %v1630_v48 = vmul.f32 -1.442695, %v460_v46 }
 0x123   :  { %1675 = vpow2.f32 %v1628_v39 }
 0x124   :  { %1677 = vpow2.f32 %v1629_v43 }
 0x125   :  { %1679 = vpow2.f32 %v1630_v48 }
 0x126   :  { %1681 = vtanh.f32 %v459_v49 }
 0x12d   :  { %v1676_v50 = vpop.eup %1675 }
 0x12e   :  { %v1678_v51 = vpop.eup %1677  ;;  %v464_v52 = vadd.f32 1.0, %v1676_v50 }
 0x12f   :  { %v470_v53 = vadd.f32 1.0, %v1678_v51  ;;  %v1680_v54 = vpop.eup %1679  ;;  %v496_v51 = vunpack.c.h.bf16 %v1632_v41 }
 0x130   :  { %1683 = vrcp.f32 %v464_v52  ;;  %v1682_v55 = vpop.eup %1681  ;;  %v477_v57 = vadd.f32 1.0, %v1680_v54 }
 0x131   :  { %1685 = vrcp.f32 %v470_v53  ;;  %v495_v53 = vunpack.c.l.bf16 %v1632_v41 }
 0x132   :  { %1687 = vrcp.f32 %v477_v57 }
 0x13a   :  { %v1684_v56 = vpop.eup %1683 }
 0x13b   :  { %v1686_v27 = vpop.eup %1685  ;;  %v482_v29 = vmul.f32 %v1684_v56, %v1682_v55 }
 0x13c   :  { %v481_v30 = vmul.f32 %v1686_v27, %v2020_v58  ;;  %v1688_v32 = vpop.eup %1687  ;;  %v1631_v58 = vld [vmem:[%s2527_s0 + $0x10] sm:$0xff] }
 0x13d   :  { %v493_v36 = vunpack.c.l.bf16 %v1631_v58  ;;  %v494_v37 = vunpack.c.h.bf16 %v1631_v58 }
 0x13e   :  { %v2165_v31 = vadd.f32 %v482_v29, %v481_v30 }
 0x140   :  { %1689 = vtanh.f32 %v2165_v31 }
 0x14a   :  { %v1690_v33 = vpop.eup %1689 }
 0x14b   :  { %v485_v34 = vmul.f32 %v1690_v33, %v1688_v32 }
 0x14d   :  { %v488_v35 = vpack.c.bf16 %v485_v34, %v485_v34 }
 0x14f   :  { %489 = vst [vmem:[%s2531_s4] sm:$0xf] %v488_v35  ;;  %564 = vmatmul.mubr.bf16.vlgmr.msra.gmra.mrb[4].mxu0 %v488_v35  ;;  %605 = vmatmul.mubr.bf16.vlgmr.msra.gmra.mrb[4].mxu1 %v488_v35 }
 0x150   :  { %689 = vmatpush1.bf16.msra.mxu0 %v2026_v61  ;;  %730 = vmatpush1.bf16.msra.mxu1 %v2038_v1 }
 0x151   :  { %690 = vmatprep.subr.bf16.mxu0 %v2028_v62  ;;  %731 = vmatprep.subr.bf16.mxu1 %v2040_v2 }
 0x152   :  { %720 = vmatprep.mubr.bf16.mxu0 %v1805_v59  ;;  %761 = vmatprep.mubr.bf16.mxu1 %v1805_v59 }
 0x154   :  { %691 = vmatpush1.bf16.msra.mxu0 %v2035_v0  ;;  %732 = vmatpush1.bf16.msra.mxu1 %v2046_v4 }
 0x155   :  { %692 = vmatprep.subr.bf16.mxu0 %v2042_v3  ;;  %733 = vmatprep.subr.bf16.mxu1 %v2049_v5 }
 0x158   :  { %693 = vmatpush1.bf16.msra.mxu0 %v2052_v6  ;;  %734 = vmatpush1.bf16.msra.mxu1 %v2058_v8 }
 0x159   :  { %694 = vmatprep.subr.bf16.mxu0 %v2054_v7  ;;  %735 = vmatprep.subr.bf16.mxu1 %v2061_v9 }
 0x15c   :  { %695 = vmatpush1.bf16.msra.mxu0 %v2064_v10  ;;  %736 = vmatpush1.bf16.msra.mxu1 %v2070_v12 }
 0x15d   :  { %696 = vmatprep.subr.bf16.mxu0 %v2066_v11  ;;  %737 = vmatprep.subr.bf16.mxu1 %v2073_v13 }
 0x160   :  { %697 = vmatpush1.bf16.msra.mxu0 %v2076_v14  ;;  %738 = vmatpush1.bf16.msra.mxu1 %v2082_v16 }
 0x161   :  { %698 = vmatprep.subr.bf16.mxu0 %v2078_v15  ;;  %739 = vmatprep.subr.bf16.mxu1 %v2085_v17 }
 0x164   :  { %699 = vmatpush1.bf16.msra.mxu0 %v2088_v18  ;;  %740 = vmatpush1.bf16.msra.mxu1 %v2094_v20 }
 0x165   :  { %700 = vmatprep.subr.bf16.mxu0 %v2090_v19  ;;  %741 = vmatprep.subr.bf16.mxu1 %v2097_v21 }
 0x168   :  { %701 = vmatpush1.bf16.msra.mxu0 %v2100_v22  ;;  %742 = vmatpush1.bf16.msra.mxu1 %v2106_v24 }
 0x169   :  { %702 = vmatprep.subr.bf16.mxu0 %v2102_v23  ;;  %743 = vmatprep.subr.bf16.mxu1 %v2109_v25 }
 0x16c   :  { %703 = vmatpush1.bf16.msra.mxu0 %v2112_v26  ;;  %744 = vmatpush1.bf16.msra.mxu1 %v2118_v28 }
 0x16d   :  { %845 = vmatprep.subr.bf16.mxu0 %v2024_v60  ;;  %886 = vmatprep.subr.bf16.mxu1 %v2032_v63 }
 0x222   :  { %v565_v38 = vpop.f32.mrb[4].mxu0  ;;  %v606_v39 = vpop.f32.mrb[4].mxu1 }
 0x223   :  { %v613_v40 = vadd.f32 %v565_v38, %v493_v36  ;;  %v567_v42 = vpop.f32.mrb[5].mxu0  ;;  %v608_v43 = vpop.f32.mrb[5].mxu1  ;;  %v615_v55 = vadd.f32 %v606_v39, %v495_v53 }
 0x224   :  { %v614_v44 = vadd.f32 %v567_v42, %v494_v37  ;;  %v569_v45 = vpop.f32.mrb[6].mxu0  ;;  %v610_v46 = vpop.f32.mrb[6].mxu1  ;;  %v616_v52 = vadd.f32 %v608_v43, %v496_v51 }
 0x225   :  { %v1633_v47 = vmul.f32 -1.442695, %v613_v40  ;;  %v570_v48 = vpop.f32.mrb[7].mxu0  ;;  %v611_v49 = vpop.f32.mrb[7].mxu1 }
 0x226   :  { %v1634_v50 = vmul.f32 -1.442695, %v614_v44  ;;  %v1635_v54 = vmul.f32 -1.442695, %v616_v52 }
 0x227   :  { %1691 = vpow2.f32 %v1633_v47  ;;  %v1638_v47 = vld [vmem:[%s2527_s0 + $0x28] sm:$0xff] }
 0x228   :  { %1693 = vpow2.f32 %v1634_v50 }
 0x229   :  { %1695 = vpow2.f32 %v1635_v54 }
 0x22a   :  { %1697 = vtanh.f32 %v615_v55  ;;  %v653_v55 = vunpack.c.h.bf16 %v1638_v47 }
 0x231   :  { %v1692_v56 = vpop.eup %1691 }
 0x232   :  { %v1694_v57 = vpop.eup %1693  ;;  %v620_v27 = vadd.f32 1.0, %v1692_v56 }
 0x233   :  { %v626_v29 = vadd.f32 1.0, %v1694_v57  ;;  %v1696_v30 = vpop.eup %1695  ;;  %v652_v57 = vunpack.c.l.bf16 %v1638_v47 }
 0x234   :  { %1699 = vrcp.f32 %v620_v27  ;;  %v1698_v32 = vpop.eup %1697  ;;  %v633_v58 = vadd.f32 1.0, %v1696_v30 }
 0x235   :  { %1701 = vrcp.f32 %v626_v29 }
 0x236   :  { %1703 = vrcp.f32 %v633_v58 }
 0x23e   :  { %v1700_v33 = vpop.eup %1699 }
 0x23f   :  { %v1702_v34 = vpop.eup %1701  ;;  %v638_v35 = vmul.f32 %v1700_v33, %v1698_v32 }
 0x240   :  { %v637_v36 = vmul.f32 %v1702_v34, %v2165_v31  ;;  %v1704_v38 = vpop.eup %1703  ;;  %v1637_v31 = vld [vmem:[%s2527_s0 + $0x20] sm:$0xff] }
 0x241   :  { %v650_v42 = vunpack.c.l.bf16 %v1637_v31  ;;  %v651_v43 = vunpack.c.h.bf16 %v1637_v31 }
 0x242   :  { %v2212_v37 = vadd.f32 %v638_v35, %v637_v36 }
 0x244   :  { %1705 = vtanh.f32 %v2212_v37 }
 0x24e   :  { %v1706_v39 = vpop.eup %1705 }
 0x24f   :  { %v641_v40 = vmul.f32 %v1706_v39, %v1704_v38 }
 0x251   :  { %v644_v41 = vpack.c.bf16 %v641_v40, %v641_v40 }
 0x253   :  { %1636 = vst [vmem:[%s2531_s4 + $0x4] sm:$0xf] %v644_v41  ;;  %721 = vmatmul.mubr.bf16.vlgmr.msra.gmra.mrb[8].mxu0 %v644_v41  ;;  %762 = vmatmul.mubr.bf16.vlgmr.msra.gmra.mrb[8].mxu1 %v644_v41 }
 0x254   :  { %846 = vmatpush1.bf16.msra.mxu0 %v2026_v61  ;;  %887 = vmatpush1.bf16.msra.mxu1 %v2038_v1 }
 0x255   :  { %847 = vmatprep.subr.bf16.mxu0 %v2028_v62  ;;  %888 = vmatprep.subr.bf16.mxu1 %v2040_v2 }
 0x256   :  { %877 = vmatprep.mubr.bf16.mxu0 %v1805_v59  ;;  %918 = vmatprep.mubr.bf16.mxu1 %v1805_v59 }
 0x258   :  { %848 = vmatpush1.bf16.msra.mxu0 %v2035_v0  ;;  %889 = vmatpush1.bf16.msra.mxu1 %v2046_v4 }
 0x259   :  { %849 = vmatprep.subr.bf16.mxu0 %v2042_v3  ;;  %890 = vmatprep.subr.bf16.mxu1 %v2049_v5 }
 0x25c   :  { %850 = vmatpush1.bf16.msra.mxu0 %v2052_v6  ;;  %891 = vmatpush1.bf16.msra.mxu1 %v2058_v8 }
 0x25d   :  { %851 = vmatprep.subr.bf16.mxu0 %v2054_v7  ;;  %892 = vmatprep.subr.bf16.mxu1 %v2061_v9 }
 0x260   :  { %852 = vmatpush1.bf16.msra.mxu0 %v2064_v10  ;;  %893 = vmatpush1.bf16.msra.mxu1 %v2070_v12 }
 0x261   :  { %853 = vmatprep.subr.bf16.mxu0 %v2066_v11  ;;  %894 = vmatprep.subr.bf16.mxu1 %v2073_v13 }
 0x264   :  { %854 = vmatpush1.bf16.msra.mxu0 %v2076_v14  ;;  %895 = vmatpush1.bf16.msra.mxu1 %v2082_v16 }
 0x265   :  { %855 = vmatprep.subr.bf16.mxu0 %v2078_v15  ;;  %896 = vmatprep.subr.bf16.mxu1 %v2085_v17 }
 0x268   :  { %856 = vmatpush1.bf16.msra.mxu0 %v2088_v18  ;;  %897 = vmatpush1.bf16.msra.mxu1 %v2094_v20 }
 0x269   :  { %857 = vmatprep.subr.bf16.mxu0 %v2090_v19  ;;  %898 = vmatprep.subr.bf16.mxu1 %v2097_v21 }
 0x26c   :  { %858 = vmatpush1.bf16.msra.mxu0 %v2100_v22  ;;  %899 = vmatpush1.bf16.msra.mxu1 %v2106_v24 }
 0x26d   :  { %859 = vmatprep.subr.bf16.mxu0 %v2102_v23  ;;  %900 = vmatprep.subr.bf16.mxu1 %v2109_v25 }
 0x270   :  { %860 = vmatpush1.bf16.msra.mxu0 %v2112_v26  ;;  %901 = vmatpush1.bf16.msra.mxu1 %v2118_v28 }
 0x271   :  { %1002 = vmatprep.subr.bf16.mxu0 %v2024_v60  ;;  %1043 = vmatprep.subr.bf16.mxu1 %v2032_v63 }
 0x326   :  { %v722_v44 = vpop.f32.mrb[8].mxu0  ;;  %v763_v45 = vpop.f32.mrb[8].mxu1 }
 0x327   :  { %v770_v46 = vadd.f32 %v722_v44, %v650_v42  ;;  %v724_v48 = vpop.f32.mrb[9].mxu0  ;;  %v765_v49 = vpop.f32.mrb[9].mxu1  ;;  %v772_v29 = vadd.f32 %v763_v45, %v652_v57  ;;  %v2332_v57 = vld [vmem:[#allocation2 + $0x30] sm:$0xff] }
 0x328   :  { %v771_v50 = vadd.f32 %v724_v48, %v651_v43  ;;  %v726_v51 = vpop.f32.mrb[10].mxu0  ;;  %v767_v60 = vpop.f32.mrb[10].mxu1  ;;  %v773_v56 = vadd.f32 %v765_v49, %v653_v55  ;;  %v2326_v55 = vld [vmem:[#allocation2 + $0x38] sm:$0xff] }
 0x329   :  { %v1639_v52 = vmul.f32 -1.442695, %v770_v46  ;;  %v727_v63 = vpop.f32.mrb[11].mxu0  ;;  %v768_v53 = vpop.f32.mrb[11].mxu1  ;;  %v2312_v60 = vld [vmem:[#allocation2 + $0x8] sm:$0xff] }
 0x32a   :  { %v1640_v54 = vmul.f32 -1.442695, %v771_v50  ;;  %v1641_v27 = vmul.f32 -1.442695, %v773_v56  ;;  %v2318_v63 = vld [vmem:[#allocation2] sm:$0xff]  ;;  %v2320_v53 = vld [vmem:[#allocation2 + $0x10] sm:$0xff] }
 0x32b   :  { %1707 = vpow2.f32 %v1639_v52  ;;  %v2314_v52 = vld [vmem:[#allocation2 + $0x18] sm:$0xff]  ;;  %v2330_v56 = vld [vmem:[#allocation2 + $0x20] sm:$0xff] }
 0x32c   :  { %1709 = vpow2.f32 %v1640_v54  ;;  %v2324_v54 = vld [vmem:[#allocation2 + $0x28] sm:$0xff] }
 0x32d   :  { %1711 = vpow2.f32 %v1641_v27  ;;  %v2336_v27 = vld [vmem:[#allocation2 + $0x48] sm:$0xff] }
 0x32e   :  { %1713 = vtanh.f32 %v772_v29  ;;  %v2338_v29 = vld [vmem:[#allocation2 + $0x58] sm:$0xff] }
 0x335   :  { %v1708_v30 = vpop.eup %1707 }
 0x336   :  { %v1710_v32 = vpop.eup %1709  ;;  %v777_v33 = vadd.f32 1.0, %v1708_v30  ;;  %v2342_v30 = vld [vmem:[#allocation2 + $0x40] sm:$0xff] }
 0x337   :  { %v783_v34 = vadd.f32 1.0, %v1710_v32  ;;  %v1712_v35 = vpop.eup %1711  ;;  %v2344_v32 = vld [vmem:[#allocation2 + $0x50] sm:$0xff] }
 0x338   :  { %1715 = vrcp.f32 %v777_v33  ;;  %v1714_v58 = vpop.eup %1713  ;;  %v790_v40 = vadd.f32 1.0, %v1712_v35  ;;  %v2348_v33 = vld [vmem:[#allocation2 + $0x68] sm:$0xff]  ;;  %v2354_v35 = vld [vmem:[#allocation2 + $0x60] sm:$0xff] }
 0x339   :  { %1717 = vrcp.f32 %v783_v34  ;;  %v2350_v34 = vld [vmem:[#allocation2 + $0x78] sm:$0xff] }
 0x33a   :  { %1719 = vrcp.f32 %v790_v40  ;;  %v2368_v40 = vld [vmem:[#allocation2 + $0x90] sm:$0xff] }
 0x342   :  { %v1716_v36 = vpop.eup %1715 }
 0x343   :  { %v1718_v38 = vpop.eup %1717  ;;  %v795_v39 = vmul.f32 %v1716_v36, %v1714_v58  ;;  %v2356_v58 = vld [vmem:[#allocation2 + $0x70] sm:$0xff]  ;;  %v2360_v36 = vld [vmem:[#allocation2 + $0x88] sm:$0xff] }
 0x344   :  { %v794_v41 = vmul.f32 %v1718_v38, %v2212_v37  ;;  %v1720_v42 = vpop.eup %1719  ;;  %v2362_v38 = vld [vmem:[#allocation2 + $0x98] sm:$0xff] }
 0x346   :  { %v2259_v31 = vadd.f32 %v795_v39, %v794_v41  ;;  %v2364_v39 = vld [vmem:[#allocation2 + $0x80] sm:$0xff]  ;;  %v2370_v41 = vld [vmem:[#allocation2 + $0xa8] sm:$0xff] }
 0x348   :  { %1721 = vtanh.f32 %v2259_v31 }
 0x352   :  { %v1722_v43 = vpop.eup %1721 }
 0x353   :  { %v798_v44 = vmul.f32 %v1722_v43, %v1720_v42  ;;  %v2378_v42 = vld [vmem:[#allocation2 + $0xa0] sm:$0xff]  ;;  %v2380_v43 = vld [vmem:[#allocation2 + $0xb0] sm:$0xff] }
 0x355   :  { %v801_v45 = vpack.c.bf16 %v798_v44, %v798_v44  ;;  %v2382_v44 = vld [vmem:[#allocation2 + $0xc8] sm:$0xff] }
 0x357   :  { %1642 = vst [vmem:[%s2531_s4 + $0x8] sm:$0xf] %v801_v45  ;;  %878 = vmatmul.mubr.bf16.vlgmr.msra.gmra.mrb[12].mxu0 %v801_v45  ;;  %919 = vmatmul.mubr.bf16.vlgmr.msra.gmra.mrb[12].mxu1 %v801_v45  ;;  %v2384_v45 = vld [vmem:[#allocation2 + $0xd8] sm:$0xff] }
 0x358   :  { %1003 = vmatpush1.bf16.msra.mxu0 %v2026_v61  ;;  %1044 = vmatpush1.bf16.msra.mxu1 %v2038_v1  ;;  %v1643_v61 = vld [vmem:[%s2527_s0 + $0x30] sm:$0xff] }
 0x359   :  { %1004 = vmatprep.subr.bf16.mxu0 %v2028_v62  ;;  %1045 = vmatprep.subr.bf16.mxu1 %v2040_v2  ;;  %v807_v62 = vunpack.c.l.bf16 %v1643_v61 }
 0x35a   :  { %1034 = vmatprep.mubr.bf16.mxu0 %v1805_v59  ;;  %1075 = vmatprep.mubr.bf16.mxu1 %v1805_v59 }
 0x35c   :  { %1005 = vmatpush1.bf16.msra.mxu0 %v2035_v0  ;;  %1046 = vmatpush1.bf16.msra.mxu1 %v2046_v4  ;;  %v808_v0 = vunpack.c.h.bf16 %v1643_v61  ;;  %v1644_v4 = vld [vmem:[%s2527_s0 + $0x38] sm:$0xff]  ;;  %v2390_v61 = vld [vmem:[#allocation2 + $0xc0] sm:$0xff] }
 0x35d   :  { %1006 = vmatprep.subr.bf16.mxu0 %v2042_v3  ;;  %1047 = vmatprep.subr.bf16.mxu1 %v2049_v5 }
 0x360   :  { %1007 = vmatpush1.bf16.msra.mxu0 %v2052_v6  ;;  %1048 = vmatpush1.bf16.msra.mxu1 %v2058_v8 }
 0x361   :  { %1008 = vmatprep.subr.bf16.mxu0 %v2054_v7  ;;  %1049 = vmatprep.subr.bf16.mxu1 %v2061_v9 }
 0x364   :  { %1009 = vmatpush1.bf16.msra.mxu0 %v2064_v10  ;;  %1050 = vmatpush1.bf16.msra.mxu1 %v2070_v12 }
 0x365   :  { %1010 = vmatprep.subr.bf16.mxu0 %v2066_v11  ;;  %1051 = vmatprep.subr.bf16.mxu1 %v2073_v13 }
 0x368   :  { %1011 = vmatpush1.bf16.msra.mxu0 %v2076_v14  ;;  %1052 = vmatpush1.bf16.msra.mxu1 %v2082_v16  ;;  %v810_v14 = vunpack.c.h.bf16 %v1644_v4  ;;  %v809_v16 = vunpack.c.l.bf16 %v1644_v4  ;;  %v1649_v4 = vld [vmem:[%s2527_s0 + $0x40] sm:$0xff] }
 0x369   :  { %1012 = vmatprep.subr.bf16.mxu0 %v2078_v15  ;;  %1053 = vmatprep.subr.bf16.mxu1 %v2085_v17 }
 0x36c   :  { %1013 = vmatpush1.bf16.msra.mxu0 %v2088_v18  ;;  %1054 = vmatpush1.bf16.msra.mxu1 %v2094_v20 }
 0x36d   :  { %1014 = vmatprep.subr.bf16.mxu0 %v2090_v19  ;;  %1055 = vmatprep.subr.bf16.mxu1 %v2097_v21 }
 0x370   :  { %1015 = vmatpush1.bf16.msra.mxu0 %v2100_v22  ;;  %1056 = vmatpush1.bf16.msra.mxu1 %v2106_v24 }
 0x371   :  { %1016 = vmatprep.subr.bf16.mxu0 %v2102_v23  ;;  %1057 = vmatprep.subr.bf16.mxu1 %v2109_v25 }
 0x374   :  { %1017 = vmatpush1.bf16.msra.mxu0 %v2112_v26  ;;  %1058 = vmatpush1.bf16.msra.mxu1 %v2118_v28 }
 0x375   :  { %1159 = vmatprep.subr.bf16.mxu0 %v2312_v60  ;;  %1200 = vmatprep.subr.bf16.mxu1 %v2314_v52 }
 0x42a   :  { %v879_v1 = vpop.f32.mrb[12].mxu0  ;;  %v920_v2 = vpop.f32.mrb[12].mxu1 }
 0x42b   :  { %v927_v3 = vadd.f32 %v879_v1, %v807_v62  ;;  %v881_v5 = vpop.f32.mrb[13].mxu0  ;;  %v922_v6 = vpop.f32.mrb[13].mxu1  ;;  %v929_v18 = vadd.f32 %v920_v2, %v809_v16  ;;  %v2392_v62 = vld [vmem:[#allocation2 + $0xd0] sm:$0xff]  ;;  %v2396_v1 = vld [vmem:[#allocation2 + $0xf8] sm:$0xff]  ;;  %v2402_v2 = vld [vmem:[#allocation2 + $0xe0] sm:$0xff] }
 0x42c   :  { %v928_v7 = vadd.f32 %v881_v5, %v808_v0  ;;  %v883_v8 = vpop.f32.mrb[14].mxu0  ;;  %v924_v9 = vpop.f32.mrb[14].mxu1  ;;  %v930_v15 = vadd.f32 %v922_v6, %v810_v14  ;;  %v2394_v0 = vld [vmem:[#allocation2 + $0xe8] sm:$0xff]  ;;  %v964_v5 = vunpack.c.l.bf16 %v1649_v4  ;;  %v965_v6 = vunpack.c.h.bf16 %v1649_v4 }
 0x42d   :  { %v1645_v10 = vmul.f32 -1.442695, %v927_v3  ;;  %v884_v11 = vpop.f32.mrb[15].mxu0  ;;  %v925_v12 = vpop.f32.mrb[15].mxu1  ;;  %v2404_v3 = vld [vmem:[#allocation2 + $0xf0] sm:$0xff] }
 0x42e   :  { %v1646_v13 = vmul.f32 -1.442695, %v928_v7  ;;  %v1647_v17 = vmul.f32 -1.442695, %v930_v15 }
 0x42f   :  { %1723 = vpow2.f32 %v1645_v10  ;;  %v1650_v10 = vld [vmem:[%s2527_s0 + $0x48] sm:$0xff] }
 0x430   :  { %1725 = vpow2.f32 %v1646_v13 }
 0x431   :  { %1727 = vpow2.f32 %v1647_v17 }
 0x432   :  { %1729 = vtanh.f32 %v929_v18 }
 0x439   :  { %v1724_v19 = vpop.eup %1723 }
 0x43a   :  { %v1726_v20 = vpop.eup %1725  ;;  %v934_v21 = vadd.f32 1.0, %v1724_v19 }
 0x43b   :  { %v940_v22 = vadd.f32 1.0, %v1726_v20  ;;  %v1728_v23 = vpop.eup %1727  ;;  %v967_v20 = vunpack.c.h.bf16 %v1650_v10 }
 0x43c   :  { %1731 = vrcp.f32 %v934_v21  ;;  %v1730_v24 = vpop.eup %1729  ;;  %v947_v37 = vadd.f32 1.0, %v1728_v23 }
 0x43d   :  { %1733 = vrcp.f32 %v940_v22  ;;  %v966_v22 = vunpack.c.l.bf16 %v1650_v10 }
 0x43e   :  { %1735 = vrcp.f32 %v947_v37 }
 0x446   :  { %v1732_v25 = vpop.eup %1731 }
 0x447   :  { %v1734_v26 = vpop.eup %1733  ;;  %v952_v28 = vmul.f32 %v1732_v25, %v1730_v24 }
 0x448   :  { %v951_v46 = vmul.f32 %v1734_v26, %v2259_v31  ;;  %v1736_v48 = vpop.eup %1735  ;;  %v2372_v31 = vld [vmem:[#allocation2 + $0xb8] sm:$0xff] }
 0x44a   :  { %v2304_v47 = vadd.f32 %v952_v28, %v951_v46 }
 0x44c   :  { %1737 = vtanh.f32 %v2304_v47 }
 0x456   :  { %v1738_v49 = vpop.eup %1737 }
 0x457   :  { %v955_v50 = vmul.f32 %v1738_v49, %v1736_v48 }
 0x459   :  { %v958_v51 = vpack.c.bf16 %v955_v50, %v955_v50 }
 0x45b   :  { %1648 = vst [vmem:[%s2531_s4 + $0xc] sm:$0xf] %v958_v51  ;;  %1035 = vmatmul.mubr.bf16.vlgmr.msra.gmra.mrb[16].mxu0 %v958_v51  ;;  %1076 = vmatmul.mubr.bf16.vlgmr.msra.gmra.mrb[16].mxu1 %v958_v51 }
 0x45c   :  { %1191 = vmatprep.mubr.bf16.mxu0 %v1805_v59  ;;  %1232 = vmatprep.mubr.bf16.mxu1 %v1805_v59 }
 0x45d   :  { %1160 = vmatpush1.bf16.msra.mxu0 %v2318_v63  ;;  %1201 = vmatpush1.bf16.msra.mxu1 %v2320_v53 }
 0x45e   :  { %1161 = vmatprep.subr.bf16.mxu0 %v2324_v54  ;;  %1202 = vmatprep.subr.bf16.mxu1 %v2326_v55 }
 0x461   :  { %1162 = vmatpush1.bf16.msra.mxu0 %v2330_v56  ;;  %1203 = vmatpush1.bf16.msra.mxu1 %v2332_v57 }
 0x462   :  { %1163 = vmatprep.subr.bf16.mxu0 %v2336_v27  ;;  %1204 = vmatprep.subr.bf16.mxu1 %v2338_v29 }
 0x465   :  { %1164 = vmatpush1.bf16.msra.mxu0 %v2342_v30  ;;  %1205 = vmatpush1.bf16.msra.mxu1 %v2344_v32 }
 0x466   :  { %1165 = vmatprep.subr.bf16.mxu0 %v2348_v33  ;;  %1206 = vmatprep.subr.bf16.mxu1 %v2350_v34 }
 0x469   :  { %1166 = vmatpush1.bf16.msra.mxu0 %v2354_v35  ;;  %1207 = vmatpush1.bf16.msra.mxu1 %v2356_v58 }
 0x46a   :  { %1167 = vmatprep.subr.bf16.mxu0 %v2360_v36  ;;  %1208 = vmatprep.subr.bf16.mxu1 %v2362_v38 }
 0x46d   :  { %1168 = vmatpush1.bf16.msra.mxu0 %v2364_v39  ;;  %1209 = vmatpush1.bf16.msra.mxu1 %v2368_v40 }
 0x46e   :  { %1169 = vmatprep.subr.bf16.mxu0 %v2370_v41  ;;  %1210 = vmatprep.subr.bf16.mxu1 %v2372_v31 }
 0x471   :  { %1170 = vmatpush1.bf16.msra.mxu0 %v2378_v42  ;;  %1211 = vmatpush1.bf16.msra.mxu1 %v2380_v43 }
 0x472   :  { %1171 = vmatprep.subr.bf16.mxu0 %v2382_v44  ;;  %1212 = vmatprep.subr.bf16.mxu1 %v2384_v45 }
 0x475   :  { %1172 = vmatpush1.bf16.msra.mxu0 %v2390_v61  ;;  %1213 = vmatpush1.bf16.msra.mxu1 %v2392_v62 }
 0x476   :  { %1173 = vmatprep.subr.bf16.mxu0 %v2394_v0  ;;  %1214 = vmatprep.subr.bf16.mxu1 %v2396_v1 }
 0x479   :  { %1174 = vmatpush1.bf16.msra.mxu0 %v2402_v2  ;;  %1215 = vmatpush1.bf16.msra.mxu1 %v2404_v3 }
 0x47a   :  { %1316 = vmatprep.subr.bf16.mxu0 %v2312_v60  ;;  %1357 = vmatprep.subr.bf16.mxu1 %v2314_v52 }
 0x52e   :  { %v1036_v7 = vpop.f32.mrb[16].mxu0  ;;  %v1077_v8 = vpop.f32.mrb[16].mxu1 }
 0x52f   :  { %v1084_v9 = vadd.f32 %v1036_v7, %v964_v5  ;;  %v1038_v11 = vpop.f32.mrb[17].mxu0  ;;  %v1079_v12 = vpop.f32.mrb[17].mxu1  ;;  %v1086_v24 = vadd.f32 %v1077_v8, %v966_v22 }
 0x530   :  { %v1085_v13 = vadd.f32 %v1038_v11, %v965_v6  ;;  %v1040_v14 = vpop.f32.mrb[18].mxu0  ;;  %v1081_v15 = vpop.f32.mrb[18].mxu1  ;;  %v1087_v21 = vadd.f32 %v1079_v12, %v967_v20 }
 0x531   :  { %v1651_v16 = vmul.f32 -1.442695, %v1084_v9  ;;  %v1041_v17 = vpop.f32.mrb[19].mxu0  ;;  %v1082_v18 = vpop.f32.mrb[19].mxu1 }
 0x532   :  { %v1652_v19 = vmul.f32 -1.442695, %v1085_v13  ;;  %v1653_v23 = vmul.f32 -1.442695, %v1087_v21 }
 0x533   :  { %1739 = vpow2.f32 %v1651_v16  ;;  %v1656_v16 = vld [vmem:[%s2527_s0 + $0x58] sm:$0xff] }
 0x534   :  { %1741 = vpow2.f32 %v1652_v19 }
 0x535   :  { %1743 = vpow2.f32 %v1653_v23 }
 0x536   :  { %1745 = vtanh.f32 %v1086_v24  ;;  %v1124_v24 = vunpack.c.h.bf16 %v1656_v16 }
 0x53d   :  { %v1740_v25 = vpop.eup %1739 }
 0x53e   :  { %v1742_v26 = vpop.eup %1741  ;;  %v1091_v28 = vadd.f32 1.0, %v1740_v25 }
 0x53f   :  { %v1097_v37 = vadd.f32 1.0, %v1742_v26  ;;  %v1744_v46 = vpop.eup %1743  ;;  %v1123_v26 = vunpack.c.l.bf16 %v1656_v16 }
 0x540   :  { %1747 = vrcp.f32 %v1091_v28  ;;  %v1746_v48 = vpop.eup %1745  ;;  %v1104_v4 = vadd.f32 1.0, %v1744_v46 }
 0x541   :  { %1749 = vrcp.f32 %v1097_v37 }
 0x542   :  { %1751 = vrcp.f32 %v1104_v4 }
 0x54a   :  { %v1748_v49 = vpop.eup %1747 }
 0x54b   :  { %v1750_v50 = vpop.eup %1749  ;;  %v1109_v51 = vmul.f32 %v1748_v49, %v1746_v48 }
 0x54c   :  { %v1108_v5 = vmul.f32 %v1750_v50, %v2304_v47  ;;  %v1752_v7 = vpop.eup %1751  ;;  %v1655_v47 = vld [vmem:[%s2527_s0 + $0x50] sm:$0xff] }
 0x54d   :  { %v1121_v11 = vunpack.c.l.bf16 %v1655_v47  ;;  %v1122_v12 = vunpack.c.h.bf16 %v1655_v47 }
 0x54e   :  { %v2417_v6 = vadd.f32 %v1109_v51, %v1108_v5 }
 0x550   :  { %1753 = vtanh.f32 %v2417_v6 }
 0x55a   :  { %v1754_v8 = vpop.eup %1753 }
 0x55b   :  { %v1112_v9 = vmul.f32 %v1754_v8, %v1752_v7 }
 0x55d   :  { %v1115_v10 = vpack.c.bf16 %v1112_v9, %v1112_v9 }
 0x55f   :  { %1654 = vst [vmem:[%s2531_s4 + $0x10] sm:$0xf] %v1115_v10  ;;  %1192 = vmatmul.mubr.bf16.vlgmr.msra.gmra.mrb[20].mxu0 %v1115_v10  ;;  %1233 = vmatmul.mubr.bf16.vlgmr.msra.gmra.mrb[20].mxu1 %v1115_v10 }
 0x560   :  { %1317 = vmatpush1.bf16.msra.mxu0 %v2318_v63  ;;  %1358 = vmatpush1.bf16.msra.mxu1 %v2320_v53 }
 0x561   :  { %1318 = vmatprep.subr.bf16.mxu0 %v2324_v54  ;;  %1359 = vmatprep.subr.bf16.mxu1 %v2326_v55 }
 0x562   :  { %1348 = vmatprep.mubr.bf16.mxu0 %v1805_v59  ;;  %1389 = vmatprep.mubr.bf16.mxu1 %v1805_v59 }
 0x564   :  { %1319 = vmatpush1.bf16.msra.mxu0 %v2330_v56  ;;  %1360 = vmatpush1.bf16.msra.mxu1 %v2332_v57 }
 0x565   :  { %1320 = vmatprep.subr.bf16.mxu0 %v2336_v27  ;;  %1361 = vmatprep.subr.bf16.mxu1 %v2338_v29 }
 0x568   :  { %1321 = vmatpush1.bf16.msra.mxu0 %v2342_v30  ;;  %1362 = vmatpush1.bf16.msra.mxu1 %v2344_v32 }
 0x569   :  { %1322 = vmatprep.subr.bf16.mxu0 %v2348_v33  ;;  %1363 = vmatprep.subr.bf16.mxu1 %v2350_v34 }
 0x56c   :  { %1323 = vmatpush1.bf16.msra.mxu0 %v2354_v35  ;;  %1364 = vmatpush1.bf16.msra.mxu1 %v2356_v58 }
 0x56d   :  { %1324 = vmatprep.subr.bf16.mxu0 %v2360_v36  ;;  %1365 = vmatprep.subr.bf16.mxu1 %v2362_v38 }
 0x570   :  { %1325 = vmatpush1.bf16.msra.mxu0 %v2364_v39  ;;  %1366 = vmatpush1.bf16.msra.mxu1 %v2368_v40 }
 0x571   :  { %1326 = vmatprep.subr.bf16.mxu0 %v2370_v41  ;;  %1367 = vmatprep.subr.bf16.mxu1 %v2372_v31 }
 0x574   :  { %1327 = vmatpush1.bf16.msra.mxu0 %v2378_v42  ;;  %1368 = vmatpush1.bf16.msra.mxu1 %v2380_v43 }
 0x575   :  { %1328 = vmatprep.subr.bf16.mxu0 %v2382_v44  ;;  %1369 = vmatprep.subr.bf16.mxu1 %v2384_v45 }
 0x578   :  { %1329 = vmatpush1.bf16.msra.mxu0 %v2390_v61  ;;  %1370 = vmatpush1.bf16.msra.mxu1 %v2392_v62 }
 0x579   :  { %1330 = vmatprep.subr.bf16.mxu0 %v2394_v0  ;;  %1371 = vmatprep.subr.bf16.mxu1 %v2396_v1 }
 0x57c   :  { %1331 = vmatpush1.bf16.msra.mxu0 %v2402_v2  ;;  %1372 = vmatpush1.bf16.msra.mxu1 %v2404_v3 }
 0x57d   :  { %1473 = vmatprep.subr.bf16.mxu0 %v2312_v60  ;;  %1514 = vmatprep.subr.bf16.mxu1 %v2314_v52 }
 0x632   :  { %v1193_v13 = vpop.f32.mrb[20].mxu0  ;;  %v1234_v14 = vpop.f32.mrb[20].mxu1 }
 0x633   :  { %v1241_v15 = vadd.f32 %v1193_v13, %v1121_v11  ;;  %v1195_v17 = vpop.f32.mrb[21].mxu0  ;;  %v1236_v18 = vpop.f32.mrb[21].mxu1  ;;  %v1243_v37 = vadd.f32 %v1234_v14, %v1123_v26 }
 0x634   :  { %v1242_v19 = vadd.f32 %v1195_v17, %v1122_v12  ;;  %v1197_v20 = vpop.f32.mrb[22].mxu0  ;;  %v1238_v60 = vpop.f32.mrb[22].mxu1  ;;  %v1244_v25 = vadd.f32 %v1236_v18, %v1124_v24  ;;  %v1668_v24 = vld [vmem:[%s2527_s0 + $0x78] sm:$0xff] }
 0x635   :  { %v1657_v21 = vmul.f32 -1.442695, %v1241_v15  ;;  %v1198_v52 = vpop.f32.mrb[23].mxu0  ;;  %v1239_v22 = vpop.f32.mrb[23].mxu1  ;;  %v1667_v20 = vld [vmem:[%s2527_s0 + $0x70] sm:$0xff] }
 0x636   :  { %v1658_v23 = vmul.f32 -1.442695, %v1242_v19  ;;  %v1659_v28 = vmul.f32 -1.442695, %v1244_v25  ;;  %v1435_v60 = vunpack.c.l.bf16 %v1667_v20 }
 0x637   :  { %1755 = vpow2.f32 %v1657_v21  ;;  %v1436_v21 = vunpack.c.h.bf16 %v1667_v20 }
 0x638   :  { %1757 = vpow2.f32 %v1658_v23 }
 0x639   :  { %1759 = vpow2.f32 %v1659_v28 }
 0x63a   :  { %1761 = vtanh.f32 %v1243_v37 }
 0x641   :  { %v1756_v46 = vpop.eup %1755 }
 0x642   :  { %v1758_v48 = vpop.eup %1757  ;;  %v1248_v49 = vadd.f32 1.0, %v1756_v46 }
 0x643   :  { %v1254_v50 = vadd.f32 1.0, %v1758_v48  ;;  %v1760_v51 = vpop.eup %1759 }
 0x644   :  { %1763 = vrcp.f32 %v1248_v49  ;;  %v1762_v4 = vpop.eup %1761  ;;  %v1261_v9 = vadd.f32 1.0, %v1760_v51 }
 0x645   :  { %1765 = vrcp.f32 %v1254_v50 }
 0x646   :  { %1767 = vrcp.f32 %v1261_v9 }
 0x64e   :  { %v1764_v5 = vpop.eup %1763 }
 0x64f   :  { %v1766_v7 = vpop.eup %1765  ;;  %v1266_v8 = vmul.f32 %v1764_v5, %v1762_v4  ;;  %v1438_v4 = vunpack.c.h.bf16 %v1668_v24 }
 0x650   :  { %v1265_v10 = vmul.f32 %v1766_v7, %v2417_v6  ;;  %v1768_v11 = vpop.eup %1767  ;;  %v1437_v7 = vunpack.c.l.bf16 %v1668_v24 }
 0x652   :  { %v2464_v47 = vadd.f32 %v1266_v8, %v1265_v10 }
 0x654   :  { %1769 = vtanh.f32 %v2464_v47 }
 0x65e   :  { %v1770_v12 = vpop.eup %1769 }
 0x65f   :  { %v1269_v13 = vmul.f32 %v1770_v12, %v1768_v11 }
 0x661   :  { %v1272_v14 = vpack.c.bf16 %v1269_v13, %v1269_v13 }
 0x663   :  { %1660 = vst [vmem:[%s2531_s4 + $0x14] sm:$0xf] %v1272_v14  ;;  %1349 = vmatmul.mubr.bf16.vlgmr.msra.gmra.mrb[24].mxu0 %v1272_v14  ;;  %1390 = vmatmul.mubr.bf16.vlgmr.msra.gmra.mrb[24].mxu1 %v1272_v14 }
 0x664   :  { %1474 = vmatpush1.bf16.msra.mxu0 %v2318_v63  ;;  %1515 = vmatpush1.bf16.msra.mxu1 %v2320_v53 }
 0x665   :  { %1475 = vmatprep.subr.bf16.mxu0 %v2324_v54  ;;  %1516 = vmatprep.subr.bf16.mxu1 %v2326_v55 }
 0x666   :  { %1505 = vmatprep.mubr.bf16.mxu0 %v1805_v59  ;;  %1546 = vmatprep.mubr.bf16.mxu1 %v1805_v59  ;;  %v1661_v59 = vld [vmem:[%s2527_s0 + $0x60] sm:$0xff] }
 0x667   :  { %v1278_v63 = vunpack.c.l.bf16 %v1661_v59  ;;  %v1279_v53 = vunpack.c.h.bf16 %v1661_v59 }
 0x668   :  { %1476 = vmatpush1.bf16.msra.mxu0 %v2330_v56  ;;  %1517 = vmatpush1.bf16.msra.mxu1 %v2332_v57  ;;  %v1662_v57 = vld [vmem:[%s2527_s0 + $0x68] sm:$0xff] }
 0x669   :  { %1477 = vmatprep.subr.bf16.mxu0 %v2336_v27  ;;  %1518 = vmatprep.subr.bf16.mxu1 %v2338_v29 }
 0x66c   :  { %1478 = vmatpush1.bf16.msra.mxu0 %v2342_v30  ;;  %1519 = vmatpush1.bf16.msra.mxu1 %v2344_v32 }
 0x66d   :  { %1479 = vmatprep.subr.bf16.mxu0 %v2348_v33  ;;  %1520 = vmatprep.subr.bf16.mxu1 %v2350_v34 }
 0x670   :  { %1480 = vmatpush1.bf16.msra.mxu0 %v2354_v35  ;;  %1521 = vmatpush1.bf16.msra.mxu1 %v2356_v58 }
 0x671   :  { %1481 = vmatprep.subr.bf16.mxu0 %v2360_v36  ;;  %1522 = vmatprep.subr.bf16.mxu1 %v2362_v38  ;;  %v1281_v38 = vunpack.c.h.bf16 %v1662_v57 }
 0x674   :  { %1482 = vmatpush1.bf16.msra.mxu0 %v2364_v39  ;;  %1523 = vmatpush1.bf16.msra.mxu1 %v2368_v40  ;;  %v1280_v40 = vunpack.c.l.bf16 %v1662_v57 }
 0x675   :  { %1483 = vmatprep.subr.bf16.mxu0 %v2370_v41  ;;  %1524 = vmatprep.subr.bf16.mxu1 %v2372_v31 }
 0x678   :  { %1484 = vmatpush1.bf16.msra.mxu0 %v2378_v42  ;;  %1525 = vmatpush1.bf16.msra.mxu1 %v2380_v43 }
 0x679   :  { %1485 = vmatprep.subr.bf16.mxu0 %v2382_v44  ;;  %1526 = vmatprep.subr.bf16.mxu1 %v2384_v45 }
 0x67c   :  { %1486 = vmatpush1.bf16.msra.mxu0 %v2390_v61  ;;  %1527 = vmatpush1.bf16.msra.mxu1 %v2392_v62 }
 0x67d   :  { %1487 = vmatprep.subr.bf16.mxu0 %v2394_v0  ;;  %1528 = vmatprep.subr.bf16.mxu1 %v2396_v1 }
 0x680   :  { %1488 = vmatpush1.bf16.msra.mxu0 %v2402_v2  ;;  %1529 = vmatpush1.bf16.msra.mxu1 %v2404_v3 }
 0x736   :  { %v1350_v54 = vpop.f32.mrb[24].mxu0  ;;  %v1391_v55 = vpop.f32.mrb[24].mxu1 }
 0x737   :  { %v1398_v56 = vadd.f32 %v1350_v54, %v1278_v63  ;;  %v1352_v27 = vpop.f32.mrb[25].mxu0  ;;  %v1393_v29 = vpop.f32.mrb[25].mxu1  ;;  %v1400_v31 = vadd.f32 %v1391_v55, %v1280_v40 }
 0x738   :  { %v1399_v30 = vadd.f32 %v1352_v27, %v1279_v53  ;;  %v1354_v32 = vpop.f32.mrb[26].mxu0  ;;  %v1395_v33 = vpop.f32.mrb[26].mxu1  ;;  %v1401_v39 = vadd.f32 %v1393_v29, %v1281_v38 }
 0x739   :  { %v1663_v34 = vmul.f32 -1.442695, %v1398_v56  ;;  %v1355_v35 = vpop.f32.mrb[27].mxu0  ;;  %v1396_v58 = vpop.f32.mrb[27].mxu1 }
 0x73a   :  { %v1664_v36 = vmul.f32 -1.442695, %v1399_v30  ;;  %v1665_v41 = vmul.f32 -1.442695, %v1401_v39 }
 0x73b   :  { %1771 = vpow2.f32 %v1663_v34 }
 0x73c   :  { %1773 = vpow2.f32 %v1664_v36 }
 0x73d   :  { %1775 = vpow2.f32 %v1665_v41 }
 0x73e   :  { %1777 = vtanh.f32 %v1400_v31 }
 0x745   :  { %v1772_v42 = vpop.eup %1771 }
 0x746   :  { %v1774_v43 = vpop.eup %1773  ;;  %v1405_v44 = vadd.f32 1.0, %v1772_v42 }
 0x747   :  { %v1411_v45 = vadd.f32 1.0, %v1774_v43  ;;  %v1776_v61 = vpop.eup %1775 }
 0x748   :  { %1779 = vrcp.f32 %v1405_v44  ;;  %v1778_v62 = vpop.eup %1777  ;;  %v1418_v3 = vadd.f32 1.0, %v1776_v61 }
 0x749   :  { %1781 = vrcp.f32 %v1411_v45 }
 0x74a   :  { %1783 = vrcp.f32 %v1418_v3 }
 0x752   :  { %v1780_v0 = vpop.eup %1779 }
 0x753   :  { %v1782_v1 = vpop.eup %1781  ;;  %v1423_v2 = vmul.f32 %v1780_v0, %v1778_v62 }
 0x754   :  { %v1422_v6 = vmul.f32 %v1782_v1, %v2464_v47  ;;  %v1784_v16 = vpop.eup %1783 }
 0x756   :  { %v1424_v15 = vadd.f32 %v1423_v2, %v1422_v6 }
 0x758   :  { %1785 = vtanh.f32 %v1424_v15 }
 0x762   :  { %v1786_v17 = vpop.eup %1785 }
 0x763   :  { %v1426_v18 = vmul.f32 %v1786_v17, %v1784_v16 }
 0x765   :  { %v1429_v19 = vpack.c.bf16 %v1426_v18, %v1426_v18 }
 0x767   :  { %1666 = vst [vmem:[%s2531_s4 + $0x18] sm:$0xf] %v1429_v19  ;;  %1506 = vmatmul.mubr.bf16.vlgmr.msra.gmra.mrb[28].mxu0 %v1429_v19  ;;  %1547 = vmatmul.mubr.bf16.vlgmr.msra.gmra.mrb[28].mxu1 %v1429_v19 }
 0x83a   :  { %v1507_v52 = vpop.f32.mrb[28].mxu0  ;;  %v1548_v22 = vpop.f32.mrb[28].mxu1 }
 0x83b   :  { %v1555_v23 = vadd.f32 %v1507_v52, %v1435_v60  ;;  %v1509_v25 = vpop.f32.mrb[29].mxu0  ;;  %v1550_v26 = vpop.f32.mrb[29].mxu1  ;;  %v1557_v9 = vadd.f32 %v1548_v22, %v1437_v7 }
 0x83c   :  { %v1556_v28 = vadd.f32 %v1509_v25, %v1436_v21  ;;  %v1511_v37 = vpop.f32.mrb[30].mxu0  ;;  %v1552_v46 = vpop.f32.mrb[30].mxu1  ;;  %v1558_v5 = vadd.f32 %v1550_v26, %v1438_v4 }
 0x83d   :  { %v1669_v48 = vmul.f32 -1.442695, %v1555_v23  ;;  %v1512_v49 = vpop.f32.mrb[31].mxu0  ;;  %v1553_v50 = vpop.f32.mrb[31].mxu1 }
 0x83e   :  { %v1670_v51 = vmul.f32 -1.442695, %v1556_v28  ;;  %v1671_v8 = vmul.f32 -1.442695, %v1558_v5 }
 0x83f   :  { %1787 = vpow2.f32 %v1669_v48 }
 0x840   :  { %1789 = vpow2.f32 %v1670_v51 }
 0x841   :  { %1791 = vpow2.f32 %v1671_v8 }
 0x842   :  { %1793 = vtanh.f32 %v1557_v9 }
 0x849   :  { %v1788_v10 = vpop.eup %1787 }
 0x84a   :  { %v1790_v47 = vpop.eup %1789  ;;  %v1562_v11 = vadd.f32 1.0, %v1788_v10 }
 0x84b   :  { %v1568_v12 = vadd.f32 1.0, %v1790_v47  ;;  %v1792_v13 = vpop.eup %1791 }
 0x84c   :  { %1795 = vrcp.f32 %v1562_v11  ;;  %v1794_v14 = vpop.eup %1793  ;;  %v1575_v54 = vadd.f32 1.0, %v1792_v13 }
 0x84d   :  { %1797 = vrcp.f32 %v1568_v12 }
 0x84e   :  { %1799 = vrcp.f32 %v1575_v54 }
 0x856   :  { %v1796_v59 = vpop.eup %1795 }
 0x857   :  { %v1798_v63 = vpop.eup %1797  ;;  %v1580_v53 = vmul.f32 %v1796_v59, %v1794_v14 }
 0x858   :  { %v1579_v55 = vmul.f32 %v1798_v63, %v1424_v15  ;;  %v1800_v57 = vpop.eup %1799 }
 0x85a   :  { %v1581_v56 = vadd.f32 %v1580_v53, %v1579_v55 }
 0x85c   :  { %1801 = vtanh.f32 %v1581_v56  ;;  %1595 = vst [vmem:[%s2533_s6] sm:$0xff] %v1581_v56 }
 0x866   :  { %v1802_v27 = vpop.eup %1801 }
 0x867   :  { %v1583_v29 = vmul.f32 %v1802_v27, %v1800_v57 }
 0x869   :  { %v1586_v30 = vpack.c.bf16 %v1583_v29, %v1583_v29  ;;  %1593 = vst [vmem:[%s2532_s5] sm:$0xff] %v1583_v29 }
 0x86b   :  { %1672 = vst [vmem:[%s2531_s4 + $0x1c] sm:$0xf] %v1586_v30 }
 0x86c   :  { %1608 = vsyncmov [#allocation5] }
 0x86f   :  { %s1609_s16 = vpop.sfrf %1608 }
 0x870   :  { %p1673_p0 = scmp.ne.s32.totalorder %s1609_s16, 0 }
 0x872   :  { %1613 = shalt.err (%p1673_p0)  }

</bundles_post_ra>
